<compile_context>
chip_gen: v5e
topology: v5e:2x2
jax: 0.10.0
libtpu: 0.0.40
codegen_flags: <defaults>
</compile_context>

<pallas_src>
import jax
import jax.numpy as jnp
from jax.experimental import pallas as pl
from jax.experimental.pallas import tpu as pltpu

_ROW_GROUP = 16  # tokens gathered per grid step == sublanes of one bf16 output tile


def _round_up(x, m):
    return (x + m - 1) // m * m


# ---------------------------------------------------------------------------
# Stage 1: embedding gather  ( token_emb[ids] + pos_emb[pos] ), group-batched
# ---------------------------------------------------------------------------
def _embed_kernel(ids_ref, pos_ref, tok_hbm, out_ref, buf, sems):
    # ids_ref: SMEM scalar-prefetch ids (m_pad,)
    # pos_ref: (GROUP, dim) auto-pipelined positional tile
    # tok_hbm: full (vocab, dim) token table left in HBM
    g = pl.program_id(0)
    base = g * _ROW_GROUP

    # Issue all row gathers for this group, then wait: small DMAs overlap.
    copies = []
    for r in range(_ROW_GROUP):                       # static unroll
        tok_id = ids_ref[base + r]
        cp = pltpu.make_async_copy(
            tok_hbm.at[pl.ds(tok_id, 1), :],
            buf.at[pl.ds(r, 1), :],
            sems.at[r])
        cp.start()
        copies.append(cp)
    for cp in copies:
        cp.wait()

    # Full-tile unmasked store (bf16 output).
    out_ref[...] = (buf[...] + pos_ref[...]).astype(out_ref.dtype)


def _embed_gather(ids_flat, tok_emb, pos_tbl, m_pad, out_dtype=jnp.bfloat16):
    dim = tok_emb.shape[1]
    n_pos_groups = pos_tbl.shape[0] // _ROW_GROUP
    grid = (m_pad // _ROW_GROUP,)

    def pos_map(g, ids):
        # group g covers flat rows [G*g, G*g+G); since n_pad % G == 0 these are
        # consecutive positions starting at (G*g) % n_pad.
        return (g % n_pos_groups, 0)

    def out_map(g, ids):
        return (g, 0)

    return pl.pallas_call(
        _embed_kernel,
        out_shape=jax.ShapeDtypeStruct((m_pad, dim), out_dtype),
        grid_spec=pltpu.PrefetchScalarGridSpec(
            num_scalar_prefetch=1,
            grid=grid,
            in_specs=[
                pl.BlockSpec((_ROW_GROUP, dim), pos_map),   # pos tile (auto-DMA)
                pl.BlockSpec(memory_space=pl.ANY),          # token table (HBM)
            ],
            out_specs=pl.BlockSpec((_ROW_GROUP, dim), out_map),
            scratch_shapes=[
                pltpu.VMEM((_ROW_GROUP, dim), tok_emb.dtype),
                pltpu.SemaphoreType.DMA((_ROW_GROUP,)),
            ],
        ),
        compiler_params=pltpu.CompilerParams(
            dimension_semantics=("parallel",)),             # megacore on v7x
    )(ids_flat, pos_tbl, tok_emb)


# ---------------------------------------------------------------------------
# Stage 2: logits projection  ( x @ W.T + b ), (M, N, K) tiled matmul
# ---------------------------------------------------------------------------
def _logits_kernel(x_ref, w_ref, b_ref, out_ref, acc_ref):
    @pl.when(pl.program_id(2) == 0)
    def _():
        acc_ref[...] = jnp.zeros_like(acc_ref)

    # x_emb is already bf16 (no per-step cast); f32 accumulation on the MXU.
    acc_ref[...] += jnp.dot(x_ref[...], w_ref[...],
                            preferred_element_type=jnp.float32)

    @pl.when(pl.program_id(2) == pl.num_programs(2) - 1)
    def _():
        out_ref[...] = (acc_ref[...] + b_ref[...]).astype(out_ref.dtype)


def _logits_matmul(x_emb, w_t, b_row, tm, tn, tk, out_dtype, vmem_limit_bytes):
    m_pad, dim = x_emb.shape
    v_pad = w_t.shape[1]
    grid = (m_pad // tm, v_pad // tn, dim // tk)
    return pl.pallas_call(
        _logits_kernel,
        out_shape=jax.ShapeDtypeStruct((m_pad, v_pad), out_dtype),
        grid_spec=pltpu.PrefetchScalarGridSpec(
            num_scalar_prefetch=0,
            grid=grid,
            in_specs=[
                pl.BlockSpec((tm, tk), lambda i, j, k: (i, k)),   # activations
                pl.BlockSpec((tk, tn), lambda i, j, k: (k, j)),   # weight tile
                pl.BlockSpec((1, tn), lambda i, j, k: (0, j)),    # bias tile
            ],
            out_specs=pl.BlockSpec((tm, tn), lambda i, j, k: (i, j)),
            scratch_shapes=[pltpu.VMEM((tm, tn), jnp.float32)],
        ),
        compiler_params=pltpu.CompilerParams(
            dimension_semantics=("parallel", "parallel", "arbitrary"),
            vmem_limit_bytes=vmem_limit_bytes),
    )(x_emb, w_t, b_row)


def _pick_tk(dim):
    if dim <= 1024:
        return dim
    for cand in (512, 256, 128):
        if dim % cand == 0:
            return cand
    return dim


# ---------------------------------------------------------------------------
# One-time parameter layout (hoisted out of the per-call forward path)
# ---------------------------------------------------------------------------
def prepare_to_logits_params(w_logits, b_logits, *, tn=512):
    """w_logits: (num_tokens, dim) PyTorch nn.Linear weight; b_logits: (num_tokens,).
    Returns (w_t_bf16 (dim, v_pad), bias_row_f32 (1, v_pad), tn)."""
    num_tokens, dim = w_logits.shape
    tn = min(tn, _round_up(num_tokens, 128))     # keep stores lane-dense
    v_pad = _round_up(num_tokens, tn)
    w_t = jnp.pad(w_logits.T.astype(jnp.bfloat16),
                  ((0, 0), (0, v_pad - num_tokens)))
    b_row = jnp.pad(b_logits.astype(jnp.float32),
                    (0, v_pad - num_tokens)).reshape(1, v_pad)
    return w_t, b_row, tn


# ---------------------------------------------------------------------------
# Public wrapper (matches TransformerWrapper.forward with return_logits=True)
# ---------------------------------------------------------------------------
def transformer_wrapper_forward(ids, tok_emb, pos_emb, w_t, b_row, tn,
                                *, tm=512, out_dtype=jnp.float32,
                                vmem_budget_bytes=36 << 20):
    """ids: (b, n) int ids.  tok_emb: (num_tokens, dim).  pos_emb: (max_seq_len, dim).
    w_t/b_row/tn from prepare_to_logits_params.  Returns (b, n, num_tokens)."""
    b, n = ids.shape
    num_tokens, dim = tok_emb.shape
    max_seq_len = pos_emb.shape[0]
    assert n <= max_seq_len, "sequence longer than max_seq_len"
    assert w_t.shape[0] == dim and w_t.shape[1] % tn == 0
    v_pad = w_t.shape[1]

    # --- sequence / M padding so every GROUP row block stays within a batch ---
    n_pad = _round_up(n, _ROW_GROUP)
    m = b * n_pad

    # --- Stage-2 tile sizing under a per-generation-safe VMEM budget ---
    tk = _pick_tk(dim)
    out_bytes = jnp.dtype(out_dtype).itemsize
    tm = min(tm, _round_up(m, 128))

    def _est(tm_, tn_):
        # double-buffered inputs/outputs + f32 accumulator scratch
        return (2 * (tm_ * tk * 2 + tk * tn_ * 2 + tn_ * 4 + tm_ * tn_ * out_bytes)
                + tm_ * tn_ * 4)

    while _est(tm, tn) > vmem_budget_bytes:
        if tm >= 256 and tm % 256 == 0:
            tm //= 2
        elif tn >= 256 and tn % 256 == 0:
            tn //= 2
        else:
            break
    vmem_limit = int(max(48 << 20, _est(tm, tn) + (8 << 20)))

    m_pad = _round_up(m, tm)

    # Ids -> flat int32 scalar-prefetch operand.  Clamp so a bad id can never
    # DMA outside the table (DMA OOB is unchecked on TPU); padded rows gather
    # row 0 and are sliced away at the end.
    ids_p = jnp.pad(ids.astype(jnp.int32), ((0, 0), (0, n_pad - n)))
    ids_flat = jnp.clip(ids_p.reshape(m), 0, num_tokens - 1)
    ids_flat = jnp.pad(ids_flat, (0, m_pad - m))

    # Positional table: first n rows, padded to n_pad so group tiles line up.
    n_avail = min(n_pad, max_seq_len)
    pos_tbl = jnp.pad(pos_emb[:n_avail].astype(tok_emb.dtype),
                      ((0, n_pad - n_avail), (0, 0)))

    # Stage 1: x = token_emb(ids) + pos_emb(pos), flattened (m_pad, dim), bf16.
    x_emb = _embed_gather(ids_flat, tok_emb, pos_tbl, m_pad)

    # TODO(synk): `layers(x)` would run here; identity in this wrapper.

    # Stage 2: logits = x @ W.T + b.
    logits = _logits_matmul(x_emb, w_t, b_row, tm, tn, tk, out_dtype, vmem_limit)

    return logits[:m].reshape(b, n_pad, v_pad)[:, :n, :num_tokens]


# ---------------------------------------------------------------------------
# Reference (pure JAX) + demo
# ---------------------------------------------------------------------------
def reference_forward(ids, tok_emb, pos_emb, w_logits, b_logits):
    n = ids.shape[1]
    x = tok_emb[ids] + pos_emb[:n][None, :, :]
    # layers == identity
    return jnp.einsum("bnd,vd->bnv", x, w_logits) + b_logits[None, None, :]


if __name__ == "__main__":
    batch, seq, dim = 2, 8, 128
    num_tokens, max_seq_len = 256, 16

    key = jax.random.PRNGKey(0)
    k_ids, k_tok, k_pos, k_w, k_b = jax.random.split(key, 5)

    ids = jax.random.randint(k_ids, (batch, seq), 0, num_tokens, dtype=jnp.int32)
    tok_emb = jax.random.normal(k_tok, (num_tokens, dim), dtype=jnp.float32)
    pos_emb = jax.random.normal(k_pos, (max_seq_len, dim), dtype=jnp.float32)
    # nn.Linear(dim, num_tokens): PyTorch weight layout (num_tokens, dim)
    w_logits = (jax.random.normal(k_w, (num_tokens, dim), dtype=jnp.float32)
                / jnp.sqrt(jnp.float32(dim)))
    b_logits = jax.random.normal(k_b, (num_tokens,), dtype=jnp.float32) * 0.01

    # One-time weight layout (hoisted out of the per-call forward path).
    w_t, b_row, tn = prepare_to_logits_params(w_logits, b_logits, tn=512)

    out = transformer_wrapper_forward(ids, tok_emb, pos_emb, w_t, b_row, tn)
    out = jax.block_until_ready(out)

    ref = reference_forward(ids, tok_emb, pos_emb, w_logits, b_logits)
    assert out.shape == (batch, seq, num_tokens)
    # bf16 MXU inputs with f32 accumulation -> small tolerance vs f32 reference.
    assert jnp.allclose(out, ref, atol=3e-2, rtol=3e-2), "mismatch vs reference"

    print("KERNEL_OK")
</pallas_src>

<mosaic_0001>
module attributes {stable_mosaic.version = 11 : i64} {
  func.func @_embed_kernel(%arg0: i32, %arg1: memref<128xi32, #tpu.memory_space<smem>>, %arg2: memref<16x128xf32, #tpu.memory_space<vmem>>, %arg3: memref<256x128xf32, #tpu.memory_space<any>>, %arg4: memref<16x128xbf16, #tpu.memory_space<vmem>>, %arg5: memref<16x128xf32, #tpu.memory_space<vmem>>, %arg6: memref<16x!tpu.dma_semaphore, #tpu.memory_space<semaphore_mem>>) attributes {dimension_semantics = [#tpu.dimension_semantics<parallel>], iteration_bounds = array<i64: 8>, scalar_prefetch = 1 : i64, scratch_operands = 2 : i64, tpu.core_type = #tpu.core_type<tc>, window_params = [{transform_indices = @transform_0, window_bounds = array<i64: 16, 128>}, {}, {transform_indices = @transform_2, window_bounds = array<i64: 16, 128>}]} {
    %c16_i32 = arith.constant 16 : i32
    %0 = arith.muli %arg0, %c16_i32 : i32
    %c0_i32 = arith.constant 0 : i32
    %1 = arith.addi %0, %c0_i32 : i32
    %2 = arith.index_cast %1 : i32 to index
    %3 = memref.load %arg1[%2] : memref<128xi32, #tpu.memory_space<smem>>
    %c0_i32_0 = arith.constant 0 : i32
    %c0_i32_1 = arith.constant 0 : i32
    %4 = tpu.memref_slice %arg3[%3, %c0_i32_1] : memref<256x128xf32, #tpu.memory_space<any>> -> memref<1x128xf32, #tpu.memory_space<any>>
    %c0_i32_2 = arith.constant 0 : i32
    %c0_i32_3 = arith.constant 0 : i32
    %5 = tpu.memref_slice %arg5[%c0_i32_2, %c0_i32_3] : memref<16x128xf32, #tpu.memory_space<vmem>> -> memref<1x128xf32, #tpu.memory_space<vmem>>
    %6 = tpu.memref_slice %arg6[%c0_i32_0] : memref<16x!tpu.dma_semaphore, #tpu.memory_space<semaphore_mem>> -> memref<1x!tpu.dma_semaphore, #tpu.memory_space<semaphore_mem>>
    %7 = tpu.memref_squeeze %6 : memref<1x!tpu.dma_semaphore, #tpu.memory_space<semaphore_mem>> -> memref<!tpu.dma_semaphore, #tpu.memory_space<semaphore_mem>>
    tpu.enqueue_dma source(%4 : memref<1x128xf32, #tpu.memory_space<any>>) target(%5 : memref<1x128xf32, #tpu.memory_space<vmem>>) target_semaphore(%7 : memref<!tpu.dma_semaphore, #tpu.memory_space<semaphore_mem>>)
    %c1_i32 = arith.constant 1 : i32
    %8 = arith.addi %0, %c1_i32 : i32
    %9 = arith.index_cast %8 : i32 to index
    %10 = memref.load %arg1[%9] : memref<128xi32, #tpu.memory_space<smem>>
    %c1_i32_4 = arith.constant 1 : i32
    %c0_i32_5 = arith.constant 0 : i32
    %11 = tpu.memref_slice %arg3[%10, %c0_i32_5] : memref<256x128xf32, #tpu.memory_space<any>> -> memref<1x128xf32, #tpu.memory_space<any>>
    %c1_i32_6 = arith.constant 1 : i32
    %c0_i32_7 = arith.constant 0 : i32
    %12 = tpu.memref_slice %arg5[%c1_i32_6, %c0_i32_7] : memref<16x128xf32, #tpu.memory_space<vmem>> -> memref<1x128xf32, #tpu.memory_space<vmem>>
    %13 = tpu.memref_slice %arg6[%c1_i32_4] : memref<16x!tpu.dma_semaphore, #tpu.memory_space<semaphore_mem>> -> memref<1x!tpu.dma_semaphore, #tpu.memory_space<semaphore_mem>>
    %14 = tpu.memref_squeeze %13 : memref<1x!tpu.dma_semaphore, #tpu.memory_space<semaphore_mem>> -> memref<!tpu.dma_semaphore, #tpu.memory_space<semaphore_mem>>
    tpu.enqueue_dma source(%11 : memref<1x128xf32, #tpu.memory_space<any>>) target(%12 : memref<1x128xf32, #tpu.memory_space<vmem>>) target_semaphore(%14 : memref<!tpu.dma_semaphore, #tpu.memory_space<semaphore_mem>>)
    %c2_i32 = arith.constant 2 : i32
    %15 = arith.addi %0, %c2_i32 : i32
    %16 = arith.index_cast %15 : i32 to index
    %17 = memref.load %arg1[%16] : memref<128xi32, #tpu.memory_space<smem>>
    %c2_i32_8 = arith.constant 2 : i32
    %c0_i32_9 = arith.constant 0 : i32
    %18 = tpu.memref_slice %arg3[%17, %c0_i32_9] : memref<256x128xf32, #tpu.memory_space<any>> -> memref<1x128xf32, #tpu.memory_space<any>>
    %c2_i32_10 = arith.constant 2 : i32
    %c0_i32_11 = arith.constant 0 : i32
    %19 = tpu.memref_slice %arg5[%c2_i32_10, %c0_i32_11] : memref<16x128xf32, #tpu.memory_space<vmem>> -> memref<1x128xf32, #tpu.memory_space<vmem>>
    %20 = tpu.memref_slice %arg6[%c2_i32_8] : memref<16x!tpu.dma_semaphore, #tpu.memory_space<semaphore_mem>> -> memref<1x!tpu.dma_semaphore, #tpu.memory_space<semaphore_mem>>
    %21 = tpu.memref_squeeze %20 : memref<1x!tpu.dma_semaphore, #tpu.memory_space<semaphore_mem>> -> memref<!tpu.dma_semaphore, #tpu.memory_space<semaphore_mem>>
    tpu.enqueue_dma source(%18 : memref<1x128xf32, #tpu.memory_space<any>>) target(%19 : memref<1x128xf32, #tpu.memory_space<vmem>>) target_semaphore(%21 : memref<!tpu.dma_semaphore, #tpu.memory_space<semaphore_mem>>)
    %c3_i32 = arith.constant 3 : i32
    %22 = arith.addi %0, %c3_i32 : i32
    %23 = arith.index_cast %22 : i32 to index
    %24 = memref.load %arg1[%23] : memref<128xi32, #tpu.memory_space<smem>>
    %c3_i32_12 = arith.constant 3 : i32
    %c0_i32_13 = arith.constant 0 : i32
    %25 = tpu.memref_slice %arg3[%24, %c0_i32_13] : memref<256x128xf32, #tpu.memory_space<any>> -> memref<1x128xf32, #tpu.memory_space<any>>
    %c3_i32_14 = arith.constant 3 : i32
    %c0_i32_15 = arith.constant 0 : i32
    %26 = tpu.memref_slice %arg5[%c3_i32_14, %c0_i32_15] : memref<16x128xf32, #tpu.memory_space<vmem>> -> memref<1x128xf32, #tpu.memory_space<vmem>>
    %27 = tpu.memref_slice %arg6[%c3_i32_12] : memref<16x!tpu.dma_semaphore, #tpu.memory_space<semaphore_mem>> -> memref<1x!tpu.dma_semaphore, #tpu.memory_space<semaphore_mem>>
    %28 = tpu.memref_squeeze %27 : memref<1x!tpu.dma_semaphore, #tpu.memory_space<semaphore_mem>> -> memref<!tpu.dma_semaphore, #tpu.memory_space<semaphore_mem>>
    tpu.enqueue_dma source(%25 : memref<1x128xf32, #tpu.memory_space<any>>) target(%26 : memref<1x128xf32, #tpu.memory_space<vmem>>) target_semaphore(%28 : memref<!tpu.dma_semaphore, #tpu.memory_space<semaphore_mem>>)
    %c4_i32 = arith.constant 4 : i32
    %29 = arith.addi %0, %c4_i32 : i32
    %30 = arith.index_cast %29 : i32 to index
    %31 = memref.load %arg1[%30] : memref<128xi32, #tpu.memory_space<smem>>
    %c4_i32_16 = arith.constant 4 : i32
    %c0_i32_17 = arith.constant 0 : i32
    %32 = tpu.memref_slice %arg3[%31, %c0_i32_17] : memref<256x128xf32, #tpu.memory_space<any>> -> memref<1x128xf32, #tpu.memory_space<any>>
    %c4_i32_18 = arith.constant 4 : i32
    %c0_i32_19 = arith.constant 0 : i32
    %33 = tpu.memref_slice %arg5[%c4_i32_18, %c0_i32_19] : memref<16x128xf32, #tpu.memory_space<vmem>> -> memref<1x128xf32, #tpu.memory_space<vmem>>
    %34 = tpu.memref_slice %arg6[%c4_i32_16] : memref<16x!tpu.dma_semaphore, #tpu.memory_space<semaphore_mem>> -> memref<1x!tpu.dma_semaphore, #tpu.memory_space<semaphore_mem>>
    %35 = tpu.memref_squeeze %34 : memref<1x!tpu.dma_semaphore, #tpu.memory_space<semaphore_mem>> -> memref<!tpu.dma_semaphore, #tpu.memory_space<semaphore_mem>>
    tpu.enqueue_dma source(%32 : memref<1x128xf32, #tpu.memory_space<any>>) target(%33 : memref<1x128xf32, #tpu.memory_space<vmem>>) target_semaphore(%35 : memref<!tpu.dma_semaphore, #tpu.memory_space<semaphore_mem>>)
    %c5_i32 = arith.constant 5 : i32
    %36 = arith.addi %0, %c5_i32 : i32
    %37 = arith.index_cast %36 : i32 to index
    %38 = memref.load %arg1[%37] : memref<128xi32, #tpu.memory_space<smem>>
    %c5_i32_20 = arith.constant 5 : i32
    %c0_i32_21 = arith.constant 0 : i32
    %39 = tpu.memref_slice %arg3[%38, %c0_i32_21] : memref<256x128xf32, #tpu.memory_space<any>> -> memref<1x128xf32, #tpu.memory_space<any>>
    %c5_i32_22 = arith.constant 5 : i32
    %c0_i32_23 = arith.constant 0 : i32
    %40 = tpu.memref_slice %arg5[%c5_i32_22, %c0_i32_23] : memref<16x128xf32, #tpu.memory_space<vmem>> -> memref<1x128xf32, #tpu.memory_space<vmem>>
    %41 = tpu.memref_slice %arg6[%c5_i32_20] : memref<16x!tpu.dma_semaphore, #tpu.memory_space<semaphore_mem>> -> memref<1x!tpu.dma_semaphore, #tpu.memory_space<semaphore_mem>>
    %42 = tpu.memref_squeeze %41 : memref<1x!tpu.dma_semaphore, #tpu.memory_space<semaphore_mem>> -> memref<!tpu.dma_semaphore, #tpu.memory_space<semaphore_mem>>
    tpu.enqueue_dma source(%39 : memref<1x128xf32, #tpu.memory_space<any>>) target(%40 : memref<1x128xf32, #tpu.memory_space<vmem>>) target_semaphore(%42 : memref<!tpu.dma_semaphore, #tpu.memory_space<semaphore_mem>>)
    %c6_i32 = arith.constant 6 : i32
    %43 = arith.addi %0, %c6_i32 : i32
    %44 = arith.index_cast %43 : i32 to index
    %45 = memref.load %arg1[%44] : memref<128xi32, #tpu.memory_space<smem>>
    %c6_i32_24 = arith.constant 6 : i32
    %c0_i32_25 = arith.constant 0 : i32
    %46 = tpu.memref_slice %arg3[%45, %c0_i32_25] : memref<256x128xf32, #tpu.memory_space<any>> -> memref<1x128xf32, #tpu.memory_space<any>>
    %c6_i32_26 = arith.constant 6 : i32
    %c0_i32_27 = arith.constant 0 : i32
    %47 = tpu.memref_slice %arg5[%c6_i32_26, %c0_i32_27] : memref<16x128xf32, #tpu.memory_space<vmem>> -> memref<1x128xf32, #tpu.memory_space<vmem>>
    %48 = tpu.memref_slice %arg6[%c6_i32_24] : memref<16x!tpu.dma_semaphore, #tpu.memory_space<semaphore_mem>> -> memref<1x!tpu.dma_semaphore, #tpu.memory_space<semaphore_mem>>
    %49 = tpu.memref_squeeze %48 : memref<1x!tpu.dma_semaphore, #tpu.memory_space<semaphore_mem>> -> memref<!tpu.dma_semaphore, #tpu.memory_space<semaphore_mem>>
    tpu.enqueue_dma source(%46 : memref<1x128xf32, #tpu.memory_space<any>>) target(%47 : memref<1x128xf32, #tpu.memory_space<vmem>>) target_semaphore(%49 : memref<!tpu.dma_semaphore, #tpu.memory_space<semaphore_mem>>)
    %c7_i32 = arith.constant 7 : i32
    %50 = arith.addi %0, %c7_i32 : i32
    %51 = arith.index_cast %50 : i32 to index
    %52 = memref.load %arg1[%51] : memref<128xi32, #tpu.memory_space<smem>>
    %c7_i32_28 = arith.constant 7 : i32
    %c0_i32_29 = arith.constant 0 : i32
    %53 = tpu.memref_slice %arg3[%52, %c0_i32_29] : memref<256x128xf32, #tpu.memory_space<any>> -> memref<1x128xf32, #tpu.memory_space<any>>
    %c7_i32_30 = arith.constant 7 : i32
    %c0_i32_31 = arith.constant 0 : i32
    %54 = tpu.memref_slice %arg5[%c7_i32_30, %c0_i32_31] : memref<16x128xf32, #tpu.memory_space<vmem>> -> memref<1x128xf32, #tpu.memory_space<vmem>>
    %55 = tpu.memref_slice %arg6[%c7_i32_28] : memref<16x!tpu.dma_semaphore, #tpu.memory_space<semaphore_mem>> -> memref<1x!tpu.dma_semaphore, #tpu.memory_space<semaphore_mem>>
    %56 = tpu.memref_squeeze %55 : memref<1x!tpu.dma_semaphore, #tpu.memory_space<semaphore_mem>> -> memref<!tpu.dma_semaphore, #tpu.memory_space<semaphore_mem>>
    tpu.enqueue_dma source(%53 : memref<1x128xf32, #tpu.memory_space<any>>) target(%54 : memref<1x128xf32, #tpu.memory_space<vmem>>) target_semaphore(%56 : memref<!tpu.dma_semaphore, #tpu.memory_space<semaphore_mem>>)
    %c8_i32 = arith.constant 8 : i32
    %57 = arith.addi %0, %c8_i32 : i32
    %58 = arith.index_cast %57 : i32 to index
    %59 = memref.load %arg1[%58] : memref<128xi32, #tpu.memory_space<smem>>
    %c8_i32_32 = arith.constant 8 : i32
    %c0_i32_33 = arith.constant 0 : i32
    %60 = tpu.memref_slice %arg3[%59, %c0_i32_33] : memref<256x128xf32, #tpu.memory_space<any>> -> memref<1x128xf32, #tpu.memory_space<any>>
    %c8_i32_34 = arith.constant 8 : i32
    %c0_i32_35 = arith.constant 0 : i32
    %61 = tpu.memref_slice %arg5[%c8_i32_34, %c0_i32_35] : memref<16x128xf32, #tpu.memory_space<vmem>> -> memref<1x128xf32, #tpu.memory_space<vmem>>
    %62 = tpu.memref_slice %arg6[%c8_i32_32] : memref<16x!tpu.dma_semaphore, #tpu.memory_space<semaphore_mem>> -> memref<1x!tpu.dma_semaphore, #tpu.memory_space<semaphore_mem>>
    %63 = tpu.memref_squeeze %62 : memref<1x!tpu.dma_semaphore, #tpu.memory_space<semaphore_mem>> -> memref<!tpu.dma_semaphore, #tpu.memory_space<semaphore_mem>>
    tpu.enqueue_dma source(%60 : memref<1x128xf32, #tpu.memory_space<any>>) target(%61 : memref<1x128xf32, #tpu.memory_space<vmem>>) target_semaphore(%63 : memref<!tpu.dma_semaphore, #tpu.memory_space<semaphore_mem>>)
    %c9_i32 = arith.constant 9 : i32
    %64 = arith.addi %0, %c9_i32 : i32
    %65 = arith.index_cast %64 : i32 to index
    %66 = memref.load %arg1[%65] : memref<128xi32, #tpu.memory_space<smem>>
    %c9_i32_36 = arith.constant 9 : i32
    %c0_i32_37 = arith.constant 0 : i32
    %67 = tpu.memref_slice %arg3[%66, %c0_i32_37] : memref<256x128xf32, #tpu.memory_space<any>> -> memref<1x128xf32, #tpu.memory_space<any>>
    %c9_i32_38 = arith.constant 9 : i32
    %c0_i32_39 = arith.constant 0 : i32
    %68 = tpu.memref_slice %arg5[%c9_i32_38, %c0_i32_39] : memref<16x128xf32, #tpu.memory_space<vmem>> -> memref<1x128xf32, #tpu.memory_space<vmem>>
    %69 = tpu.memref_slice %arg6[%c9_i32_36] : memref<16x!tpu.dma_semaphore, #tpu.memory_space<semaphore_mem>> -> memref<1x!tpu.dma_semaphore, #tpu.memory_space<semaphore_mem>>
    %70 = tpu.memref_squeeze %69 : memref<1x!tpu.dma_semaphore, #tpu.memory_space<semaphore_mem>> -> memref<!tpu.dma_semaphore, #tpu.memory_space<semaphore_mem>>
    tpu.enqueue_dma source(%67 : memref<1x128xf32, #tpu.memory_space<any>>) target(%68 : memref<1x128xf32, #tpu.memory_space<vmem>>) target_semaphore(%70 : memref<!tpu.dma_semaphore, #tpu.memory_space<semaphore_mem>>)
    %c10_i32 = arith.constant 10 : i32
    %71 = arith.addi %0, %c10_i32 : i32
    %72 = arith.index_cast %71 : i32 to index
    %73 = memref.load %arg1[%72] : memref<128xi32, #tpu.memory_space<smem>>
    %c10_i32_40 = arith.constant 10 : i32
    %c0_i32_41 = arith.constant 0 : i32
    %74 = tpu.memref_slice %arg3[%73, %c0_i32_41] : memref<256x128xf32, #tpu.memory_space<any>> -> memref<1x128xf32, #tpu.memory_space<any>>
    %c10_i32_42 = arith.constant 10 : i32
    %c0_i32_43 = arith.constant 0 : i32
    %75 = tpu.memref_slice %arg5[%c10_i32_42, %c0_i32_43] : memref<16x128xf32, #tpu.memory_space<vmem>> -> memref<1x128xf32, #tpu.memory_space<vmem>>
    %76 = tpu.memref_slice %arg6[%c10_i32_40] : memref<16x!tpu.dma_semaphore, #tpu.memory_space<semaphore_mem>> -> memref<1x!tpu.dma_semaphore, #tpu.memory_space<semaphore_mem>>
    %77 = tpu.memref_squeeze %76 : memref<1x!tpu.dma_semaphore, #tpu.memory_space<semaphore_mem>> -> memref<!tpu.dma_semaphore, #tpu.memory_space<semaphore_mem>>
    tpu.enqueue_dma source(%74 : memref<1x128xf32, #tpu.memory_space<any>>) target(%75 : memref<1x128xf32, #tpu.memory_space<vmem>>) target_semaphore(%77 : memref<!tpu.dma_semaphore, #tpu.memory_space<semaphore_mem>>)
    %c11_i32 = arith.constant 11 : i32
    %78 = arith.addi %0, %c11_i32 : i32
    %79 = arith.index_cast %78 : i32 to index
    %80 = memref.load %arg1[%79] : memref<128xi32, #tpu.memory_space<smem>>
    %c11_i32_44 = arith.constant 11 : i32
    %c0_i32_45 = arith.constant 0 : i32
    %81 = tpu.memref_slice %arg3[%80, %c0_i32_45] : memref<256x128xf32, #tpu.memory_space<any>> -> memref<1x128xf32, #tpu.memory_space<any>>
    %c11_i32_46 = arith.constant 11 : i32
    %c0_i32_47 = arith.constant 0 : i32
    %82 = tpu.memref_slice %arg5[%c11_i32_46, %c0_i32_47] : memref<16x128xf32, #tpu.memory_space<vmem>> -> memref<1x128xf32, #tpu.memory_space<vmem>>
    %83 = tpu.memref_slice %arg6[%c11_i32_44] : memref<16x!tpu.dma_semaphore, #tpu.memory_space<semaphore_mem>> -> memref<1x!tpu.dma_semaphore, #tpu.memory_space<semaphore_mem>>
    %84 = tpu.memref_squeeze %83 : memref<1x!tpu.dma_semaphore, #tpu.memory_space<semaphore_mem>> -> memref<!tpu.dma_semaphore, #tpu.memory_space<semaphore_mem>>
    tpu.enqueue_dma source(%81 : memref<1x128xf32, #tpu.memory_space<any>>) target(%82 : memref<1x128xf32, #tpu.memory_space<vmem>>) target_semaphore(%84 : memref<!tpu.dma_semaphore, #tpu.memory_space<semaphore_mem>>)
    %c12_i32 = arith.constant 12 : i32
    %85 = arith.addi %0, %c12_i32 : i32
    %86 = arith.index_cast %85 : i32 to index
    %87 = memref.load %arg1[%86] : memref<128xi32, #tpu.memory_space<smem>>
    %c12_i32_48 = arith.constant 12 : i32
    %c0_i32_49 = arith.constant 0 : i32
    %88 = tpu.memref_slice %arg3[%87, %c0_i32_49] : memref<256x128xf32, #tpu.memory_space<any>> -> memref<1x128xf32, #tpu.memory_space<any>>
    %c12_i32_50 = arith.constant 12 : i32
    %c0_i32_51 = arith.constant 0 : i32
    %89 = tpu.memref_slice %arg5[%c12_i32_50, %c0_i32_51] : memref<16x128xf32, #tpu.memory_space<vmem>> -> memref<1x128xf32, #tpu.memory_space<vmem>>
    %90 = tpu.memref_slice %arg6[%c12_i32_48] : memref<16x!tpu.dma_semaphore, #tpu.memory_space<semaphore_mem>> -> memref<1x!tpu.dma_semaphore, #tpu.memory_space<semaphore_mem>>
    %91 = tpu.memref_squeeze %90 : memref<1x!tpu.dma_semaphore, #tpu.memory_space<semaphore_mem>> -> memref<!tpu.dma_semaphore, #tpu.memory_space<semaphore_mem>>
    tpu.enqueue_dma source(%88 : memref<1x128xf32, #tpu.memory_space<any>>) target(%89 : memref<1x128xf32, #tpu.memory_space<vmem>>) target_semaphore(%91 : memref<!tpu.dma_semaphore, #tpu.memory_space<semaphore_mem>>)
    %c13_i32 = arith.constant 13 : i32
    %92 = arith.addi %0, %c13_i32 : i32
    %93 = arith.index_cast %92 : i32 to index
    %94 = memref.load %arg1[%93] : memref<128xi32, #tpu.memory_space<smem>>
    %c13_i32_52 = arith.constant 13 : i32
    %c0_i32_53 = arith.constant 0 : i32
    %95 = tpu.memref_slice %arg3[%94, %c0_i32_53] : memref<256x128xf32, #tpu.memory_space<any>> -> memref<1x128xf32, #tpu.memory_space<any>>
    %c13_i32_54 = arith.constant 13 : i32
    %c0_i32_55 = arith.constant 0 : i32
    %96 = tpu.memref_slice %arg5[%c13_i32_54, %c0_i32_55] : memref<16x128xf32, #tpu.memory_space<vmem>> -> memref<1x128xf32, #tpu.memory_space<vmem>>
    %97 = tpu.memref_slice %arg6[%c13_i32_52] : memref<16x!tpu.dma_semaphore, #tpu.memory_space<semaphore_mem>> -> memref<1x!tpu.dma_semaphore, #tpu.memory_space<semaphore_mem>>
    %98 = tpu.memref_squeeze %97 : memref<1x!tpu.dma_semaphore, #tpu.memory_space<semaphore_mem>> -> memref<!tpu.dma_semaphore, #tpu.memory_space<semaphore_mem>>
    tpu.enqueue_dma source(%95 : memref<1x128xf32, #tpu.memory_space<any>>) target(%96 : memref<1x128xf32, #tpu.memory_space<vmem>>) target_semaphore(%98 : memref<!tpu.dma_semaphore, #tpu.memory_space<semaphore_mem>>)
    %c14_i32 = arith.constant 14 : i32
    %99 = arith.addi %0, %c14_i32 : i32
    %100 = arith.index_cast %99 : i32 to index
    %101 = memref.load %arg1[%100] : memref<128xi32, #tpu.memory_space<smem>>
    %c14_i32_56 = arith.constant 14 : i32
    %c0_i32_57 = arith.constant 0 : i32
    %102 = tpu.memref_slice %arg3[%101, %c0_i32_57] : memref<256x128xf32, #tpu.memory_space<any>> -> memref<1x128xf32, #tpu.memory_space<any>>
    %c14_i32_58 = arith.constant 14 : i32
    %c0_i32_59 = arith.constant 0 : i32
    %103 = tpu.memref_slice %arg5[%c14_i32_58, %c0_i32_59] : memref<16x128xf32, #tpu.memory_space<vmem>> -> memref<1x128xf32, #tpu.memory_space<vmem>>
    %104 = tpu.memref_slice %arg6[%c14_i32_56] : memref<16x!tpu.dma_semaphore, #tpu.memory_space<semaphore_mem>> -> memref<1x!tpu.dma_semaphore, #tpu.memory_space<semaphore_mem>>
    %105 = tpu.memref_squeeze %104 : memref<1x!tpu.dma_semaphore, #tpu.memory_space<semaphore_mem>> -> memref<!tpu.dma_semaphore, #tpu.memory_space<semaphore_mem>>
    tpu.enqueue_dma source(%102 : memref<1x128xf32, #tpu.memory_space<any>>) target(%103 : memref<1x128xf32, #tpu.memory_space<vmem>>) target_semaphore(%105 : memref<!tpu.dma_semaphore, #tpu.memory_space<semaphore_mem>>)
    %c15_i32 = arith.constant 15 : i32
    %106 = arith.addi %0, %c15_i32 : i32
    %107 = arith.index_cast %106 : i32 to index
    %108 = memref.load %arg1[%107] : memref<128xi32, #tpu.memory_space<smem>>
    %c15_i32_60 = arith.constant 15 : i32
    %c0_i32_61 = arith.constant 0 : i32
    %109 = tpu.memref_slice %arg3[%108, %c0_i32_61] : memref<256x128xf32, #tpu.memory_space<any>> -> memref<1x128xf32, #tpu.memory_space<any>>
    %c15_i32_62 = arith.constant 15 : i32
    %c0_i32_63 = arith.constant 0 : i32
    %110 = tpu.memref_slice %arg5[%c15_i32_62, %c0_i32_63] : memref<16x128xf32, #tpu.memory_space<vmem>> -> memref<1x128xf32, #tpu.memory_space<vmem>>
    %111 = tpu.memref_slice %arg6[%c15_i32_60] : memref<16x!tpu.dma_semaphore, #tpu.memory_space<semaphore_mem>> -> memref<1x!tpu.dma_semaphore, #tpu.memory_space<semaphore_mem>>
    %112 = tpu.memref_squeeze %111 : memref<1x!tpu.dma_semaphore, #tpu.memory_space<semaphore_mem>> -> memref<!tpu.dma_semaphore, #tpu.memory_space<semaphore_mem>>
    tpu.enqueue_dma source(%109 : memref<1x128xf32, #tpu.memory_space<any>>) target(%110 : memref<1x128xf32, #tpu.memory_space<vmem>>) target_semaphore(%112 : memref<!tpu.dma_semaphore, #tpu.memory_space<semaphore_mem>>)
    %c0_i32_64 = arith.constant 0 : i32
    %c0_i32_65 = arith.constant 0 : i32
    %113 = tpu.memref_slice %arg3[%3, %c0_i32_65] : memref<256x128xf32, #tpu.memory_space<any>> -> memref<1x128xf32, #tpu.memory_space<any>>
    %c0_i32_66 = arith.constant 0 : i32
    %c0_i32_67 = arith.constant 0 : i32
    %114 = tpu.memref_slice %arg5[%c0_i32_66, %c0_i32_67] : memref<16x128xf32, #tpu.memory_space<vmem>> -> memref<1x128xf32, #tpu.memory_space<vmem>>
    %115 = tpu.memref_slice %arg6[%c0_i32_64] : memref<16x!tpu.dma_semaphore, #tpu.memory_space<semaphore_mem>> -> memref<1x!tpu.dma_semaphore, #tpu.memory_space<semaphore_mem>>
    %116 = tpu.memref_squeeze %115 : memref<1x!tpu.dma_semaphore, #tpu.memory_space<semaphore_mem>> -> memref<!tpu.dma_semaphore, #tpu.memory_space<semaphore_mem>>
    tpu.wait_dma2 semaphore(%116 : memref<!tpu.dma_semaphore, #tpu.memory_space<semaphore_mem>>) src(%113 : memref<1x128xf32, #tpu.memory_space<any>>) dst(%114 : memref<1x128xf32, #tpu.memory_space<vmem>>)
    %c1_i32_68 = arith.constant 1 : i32
    %c0_i32_69 = arith.constant 0 : i32
    %117 = tpu.memref_slice %arg3[%10, %c0_i32_69] : memref<256x128xf32, #tpu.memory_space<any>> -> memref<1x128xf32, #tpu.memory_space<any>>
    %c1_i32_70 = arith.constant 1 : i32
    %c0_i32_71 = arith.constant 0 : i32
    %118 = tpu.memref_slice %arg5[%c1_i32_70, %c0_i32_71] : memref<16x128xf32, #tpu.memory_space<vmem>> -> memref<1x128xf32, #tpu.memory_space<vmem>>
    %119 = tpu.memref_slice %arg6[%c1_i32_68] : memref<16x!tpu.dma_semaphore, #tpu.memory_space<semaphore_mem>> -> memref<1x!tpu.dma_semaphore, #tpu.memory_space<semaphore_mem>>
    %120 = tpu.memref_squeeze %119 : memref<1x!tpu.dma_semaphore, #tpu.memory_space<semaphore_mem>> -> memref<!tpu.dma_semaphore, #tpu.memory_space<semaphore_mem>>
    tpu.wait_dma2 semaphore(%120 : memref<!tpu.dma_semaphore, #tpu.memory_space<semaphore_mem>>) src(%117 : memref<1x128xf32, #tpu.memory_space<any>>) dst(%118 : memref<1x128xf32, #tpu.memory_space<vmem>>)
    %c2_i32_72 = arith.constant 2 : i32
    %c0_i32_73 = arith.constant 0 : i32
    %121 = tpu.memref_slice %arg3[%17, %c0_i32_73] : memref<256x128xf32, #tpu.memory_space<any>> -> memref<1x128xf32, #tpu.memory_space<any>>
    %c2_i32_74 = arith.constant 2 : i32
    %c0_i32_75 = arith.constant 0 : i32
    %122 = tpu.memref_slice %arg5[%c2_i32_74, %c0_i32_75] : memref<16x128xf32, #tpu.memory_space<vmem>> -> memref<1x128xf32, #tpu.memory_space<vmem>>
    %123 = tpu.memref_slice %arg6[%c2_i32_72] : memref<16x!tpu.dma_semaphore, #tpu.memory_space<semaphore_mem>> -> memref<1x!tpu.dma_semaphore, #tpu.memory_space<semaphore_mem>>
    %124 = tpu.memref_squeeze %123 : memref<1x!tpu.dma_semaphore, #tpu.memory_space<semaphore_mem>> -> memref<!tpu.dma_semaphore, #tpu.memory_space<semaphore_mem>>
    tpu.wait_dma2 semaphore(%124 : memref<!tpu.dma_semaphore, #tpu.memory_space<semaphore_mem>>) src(%121 : memref<1x128xf32, #tpu.memory_space<any>>) dst(%122 : memref<1x128xf32, #tpu.memory_space<vmem>>)
    %c3_i32_76 = arith.constant 3 : i32
    %c0_i32_77 = arith.constant 0 : i32
    %125 = tpu.memref_slice %arg3[%24, %c0_i32_77] : memref<256x128xf32, #tpu.memory_space<any>> -> memref<1x128xf32, #tpu.memory_space<any>>
    %c3_i32_78 = arith.constant 3 : i32
    %c0_i32_79 = arith.constant 0 : i32
    %126 = tpu.memref_slice %arg5[%c3_i32_78, %c0_i32_79] : memref<16x128xf32, #tpu.memory_space<vmem>> -> memref<1x128xf32, #tpu.memory_space<vmem>>
    %127 = tpu.memref_slice %arg6[%c3_i32_76] : memref<16x!tpu.dma_semaphore, #tpu.memory_space<semaphore_mem>> -> memref<1x!tpu.dma_semaphore, #tpu.memory_space<semaphore_mem>>
    %128 = tpu.memref_squeeze %127 : memref<1x!tpu.dma_semaphore, #tpu.memory_space<semaphore_mem>> -> memref<!tpu.dma_semaphore, #tpu.memory_space<semaphore_mem>>
    tpu.wait_dma2 semaphore(%128 : memref<!tpu.dma_semaphore, #tpu.memory_space<semaphore_mem>>) src(%125 : memref<1x128xf32, #tpu.memory_space<any>>) dst(%126 : memref<1x128xf32, #tpu.memory_space<vmem>>)
    %c4_i32_80 = arith.constant 4 : i32
    %c0_i32_81 = arith.constant 0 : i32
    %129 = tpu.memref_slice %arg3[%31, %c0_i32_81] : memref<256x128xf32, #tpu.memory_space<any>> -> memref<1x128xf32, #tpu.memory_space<any>>
    %c4_i32_82 = arith.constant 4 : i32
    %c0_i32_83 = arith.constant 0 : i32
    %130 = tpu.memref_slice %arg5[%c4_i32_82, %c0_i32_83] : memref<16x128xf32, #tpu.memory_space<vmem>> -> memref<1x128xf32, #tpu.memory_space<vmem>>
    %131 = tpu.memref_slice %arg6[%c4_i32_80] : memref<16x!tpu.dma_semaphore, #tpu.memory_space<semaphore_mem>> -> memref<1x!tpu.dma_semaphore, #tpu.memory_space<semaphore_mem>>
    %132 = tpu.memref_squeeze %131 : memref<1x!tpu.dma_semaphore, #tpu.memory_space<semaphore_mem>> -> memref<!tpu.dma_semaphore, #tpu.memory_space<semaphore_mem>>
    tpu.wait_dma2 semaphore(%132 : memref<!tpu.dma_semaphore, #tpu.memory_space<semaphore_mem>>) src(%129 : memref<1x128xf32, #tpu.memory_space<any>>) dst(%130 : memref<1x128xf32, #tpu.memory_space<vmem>>)
    %c5_i32_84 = arith.constant 5 : i32
    %c0_i32_85 = arith.constant 0 : i32
    %133 = tpu.memref_slice %arg3[%38, %c0_i32_85] : memref<256x128xf32, #tpu.memory_space<any>> -> memref<1x128xf32, #tpu.memory_space<any>>
    %c5_i32_86 = arith.constant 5 : i32
    %c0_i32_87 = arith.constant 0 : i32
    %134 = tpu.memref_slice %arg5[%c5_i32_86, %c0_i32_87] : memref<16x128xf32, #tpu.memory_space<vmem>> -> memref<1x128xf32, #tpu.memory_space<vmem>>
    %135 = tpu.memref_slice %arg6[%c5_i32_84] : memref<16x!tpu.dma_semaphore, #tpu.memory_space<semaphore_mem>> -> memref<1x!tpu.dma_semaphore, #tpu.memory_space<semaphore_mem>>
    %136 = tpu.memref_squeeze %135 : memref<1x!tpu.dma_semaphore, #tpu.memory_space<semaphore_mem>> -> memref<!tpu.dma_semaphore, #tpu.memory_space<semaphore_mem>>
    tpu.wait_dma2 semaphore(%136 : memref<!tpu.dma_semaphore, #tpu.memory_space<semaphore_mem>>) src(%133 : memref<1x128xf32, #tpu.memory_space<any>>) dst(%134 : memref<1x128xf32, #tpu.memory_space<vmem>>)
    %c6_i32_88 = arith.constant 6 : i32
    %c0_i32_89 = arith.constant 0 : i32
    %137 = tpu.memref_slice %arg3[%45, %c0_i32_89] : memref<256x128xf32, #tpu.memory_space<any>> -> memref<1x128xf32, #tpu.memory_space<any>>
    %c6_i32_90 = arith.constant 6 : i32
    %c0_i32_91 = arith.constant 0 : i32
    %138 = tpu.memref_slice %arg5[%c6_i32_90, %c0_i32_91] : memref<16x128xf32, #tpu.memory_space<vmem>> -> memref<1x128xf32, #tpu.memory_space<vmem>>
    %139 = tpu.memref_slice %arg6[%c6_i32_88] : memref<16x!tpu.dma_semaphore, #tpu.memory_space<semaphore_mem>> -> memref<1x!tpu.dma_semaphore, #tpu.memory_space<semaphore_mem>>
    %140 = tpu.memref_squeeze %139 : memref<1x!tpu.dma_semaphore, #tpu.memory_space<semaphore_mem>> -> memref<!tpu.dma_semaphore, #tpu.memory_space<semaphore_mem>>
    tpu.wait_dma2 semaphore(%140 : memref<!tpu.dma_semaphore, #tpu.memory_space<semaphore_mem>>) src(%137 : memref<1x128xf32, #tpu.memory_space<any>>) dst(%138 : memref<1x128xf32, #tpu.memory_space<vmem>>)
    %c7_i32_92 = arith.constant 7 : i32
    %c0_i32_93 = arith.constant 0 : i32
    %141 = tpu.memref_slice %arg3[%52, %c0_i32_93] : memref<256x128xf32, #tpu.memory_space<any>> -> memref<1x128xf32, #tpu.memory_space<any>>
    %c7_i32_94 = arith.constant 7 : i32
    %c0_i32_95 = arith.constant 0 : i32
    %142 = tpu.memref_slice %arg5[%c7_i32_94, %c0_i32_95] : memref<16x128xf32, #tpu.memory_space<vmem>> -> memref<1x128xf32, #tpu.memory_space<vmem>>
    %143 = tpu.memref_slice %arg6[%c7_i32_92] : memref<16x!tpu.dma_semaphore, #tpu.memory_space<semaphore_mem>> -> memref<1x!tpu.dma_semaphore, #tpu.memory_space<semaphore_mem>>
    %144 = tpu.memref_squeeze %143 : memref<1x!tpu.dma_semaphore, #tpu.memory_space<semaphore_mem>> -> memref<!tpu.dma_semaphore, #tpu.memory_space<semaphore_mem>>
    tpu.wait_dma2 semaphore(%144 : memref<!tpu.dma_semaphore, #tpu.memory_space<semaphore_mem>>) src(%141 : memref<1x128xf32, #tpu.memory_space<any>>) dst(%142 : memref<1x128xf32, #tpu.memory_space<vmem>>)
    %c8_i32_96 = arith.constant 8 : i32
    %c0_i32_97 = arith.constant 0 : i32
    %145 = tpu.memref_slice %arg3[%59, %c0_i32_97] : memref<256x128xf32, #tpu.memory_space<any>> -> memref<1x128xf32, #tpu.memory_space<any>>
    %c8_i32_98 = arith.constant 8 : i32
    %c0_i32_99 = arith.constant 0 : i32
    %146 = tpu.memref_slice %arg5[%c8_i32_98, %c0_i32_99] : memref<16x128xf32, #tpu.memory_space<vmem>> -> memref<1x128xf32, #tpu.memory_space<vmem>>
    %147 = tpu.memref_slice %arg6[%c8_i32_96] : memref<16x!tpu.dma_semaphore, #tpu.memory_space<semaphore_mem>> -> memref<1x!tpu.dma_semaphore, #tpu.memory_space<semaphore_mem>>
    %148 = tpu.memref_squeeze %147 : memref<1x!tpu.dma_semaphore, #tpu.memory_space<semaphore_mem>> -> memref<!tpu.dma_semaphore, #tpu.memory_space<semaphore_mem>>
    tpu.wait_dma2 semaphore(%148 : memref<!tpu.dma_semaphore, #tpu.memory_space<semaphore_mem>>) src(%145 : memref<1x128xf32, #tpu.memory_space<any>>) dst(%146 : memref<1x128xf32, #tpu.memory_space<vmem>>)
    %c9_i32_100 = arith.constant 9 : i32
    %c0_i32_101 = arith.constant 0 : i32
    %149 = tpu.memref_slice %arg3[%66, %c0_i32_101] : memref<256x128xf32, #tpu.memory_space<any>> -> memref<1x128xf32, #tpu.memory_space<any>>
    %c9_i32_102 = arith.constant 9 : i32
    %c0_i32_103 = arith.constant 0 : i32
    %150 = tpu.memref_slice %arg5[%c9_i32_102, %c0_i32_103] : memref<16x128xf32, #tpu.memory_space<vmem>> -> memref<1x128xf32, #tpu.memory_space<vmem>>
    %151 = tpu.memref_slice %arg6[%c9_i32_100] : memref<16x!tpu.dma_semaphore, #tpu.memory_space<semaphore_mem>> -> memref<1x!tpu.dma_semaphore, #tpu.memory_space<semaphore_mem>>
    %152 = tpu.memref_squeeze %151 : memref<1x!tpu.dma_semaphore, #tpu.memory_space<semaphore_mem>> -> memref<!tpu.dma_semaphore, #tpu.memory_space<semaphore_mem>>
    tpu.wait_dma2 semaphore(%152 : memref<!tpu.dma_semaphore, #tpu.memory_space<semaphore_mem>>) src(%149 : memref<1x128xf32, #tpu.memory_space<any>>) dst(%150 : memref<1x128xf32, #tpu.memory_space<vmem>>)
    %c10_i32_104 = arith.constant 10 : i32
    %c0_i32_105 = arith.constant 0 : i32
    %153 = tpu.memref_slice %arg3[%73, %c0_i32_105] : memref<256x128xf32, #tpu.memory_space<any>> -> memref<1x128xf32, #tpu.memory_space<any>>
    %c10_i32_106 = arith.constant 10 : i32
    %c0_i32_107 = arith.constant 0 : i32
    %154 = tpu.memref_slice %arg5[%c10_i32_106, %c0_i32_107] : memref<16x128xf32, #tpu.memory_space<vmem>> -> memref<1x128xf32, #tpu.memory_space<vmem>>
    %155 = tpu.memref_slice %arg6[%c10_i32_104] : memref<16x!tpu.dma_semaphore, #tpu.memory_space<semaphore_mem>> -> memref<1x!tpu.dma_semaphore, #tpu.memory_space<semaphore_mem>>
    %156 = tpu.memref_squeeze %155 : memref<1x!tpu.dma_semaphore, #tpu.memory_space<semaphore_mem>> -> memref<!tpu.dma_semaphore, #tpu.memory_space<semaphore_mem>>
    tpu.wait_dma2 semaphore(%156 : memref<!tpu.dma_semaphore, #tpu.memory_space<semaphore_mem>>) src(%153 : memref<1x128xf32, #tpu.memory_space<any>>) dst(%154 : memref<1x128xf32, #tpu.memory_space<vmem>>)
    %c11_i32_108 = arith.constant 11 : i32
    %c0_i32_109 = arith.constant 0 : i32
    %157 = tpu.memref_slice %arg3[%80, %c0_i32_109] : memref<256x128xf32, #tpu.memory_space<any>> -> memref<1x128xf32, #tpu.memory_space<any>>
    %c11_i32_110 = arith.constant 11 : i32
    %c0_i32_111 = arith.constant 0 : i32
    %158 = tpu.memref_slice %arg5[%c11_i32_110, %c0_i32_111] : memref<16x128xf32, #tpu.memory_space<vmem>> -> memref<1x128xf32, #tpu.memory_space<vmem>>
    %159 = tpu.memref_slice %arg6[%c11_i32_108] : memref<16x!tpu.dma_semaphore, #tpu.memory_space<semaphore_mem>> -> memref<1x!tpu.dma_semaphore, #tpu.memory_space<semaphore_mem>>
    %160 = tpu.memref_squeeze %159 : memref<1x!tpu.dma_semaphore, #tpu.memory_space<semaphore_mem>> -> memref<!tpu.dma_semaphore, #tpu.memory_space<semaphore_mem>>
    tpu.wait_dma2 semaphore(%160 : memref<!tpu.dma_semaphore, #tpu.memory_space<semaphore_mem>>) src(%157 : memref<1x128xf32, #tpu.memory_space<any>>) dst(%158 : memref<1x128xf32, #tpu.memory_space<vmem>>)
    %c12_i32_112 = arith.constant 12 : i32
    %c0_i32_113 = arith.constant 0 : i32
    %161 = tpu.memref_slice %arg3[%87, %c0_i32_113] : memref<256x128xf32, #tpu.memory_space<any>> -> memref<1x128xf32, #tpu.memory_space<any>>
    %c12_i32_114 = arith.constant 12 : i32
    %c0_i32_115 = arith.constant 0 : i32
    %162 = tpu.memref_slice %arg5[%c12_i32_114, %c0_i32_115] : memref<16x128xf32, #tpu.memory_space<vmem>> -> memref<1x128xf32, #tpu.memory_space<vmem>>
    %163 = tpu.memref_slice %arg6[%c12_i32_112] : memref<16x!tpu.dma_semaphore, #tpu.memory_space<semaphore_mem>> -> memref<1x!tpu.dma_semaphore, #tpu.memory_space<semaphore_mem>>
    %164 = tpu.memref_squeeze %163 : memref<1x!tpu.dma_semaphore, #tpu.memory_space<semaphore_mem>> -> memref<!tpu.dma_semaphore, #tpu.memory_space<semaphore_mem>>
    tpu.wait_dma2 semaphore(%164 : memref<!tpu.dma_semaphore, #tpu.memory_space<semaphore_mem>>) src(%161 : memref<1x128xf32, #tpu.memory_space<any>>) dst(%162 : memref<1x128xf32, #tpu.memory_space<vmem>>)
    %c13_i32_116 = arith.constant 13 : i32
    %c0_i32_117 = arith.constant 0 : i32
    %165 = tpu.memref_slice %arg3[%94, %c0_i32_117] : memref<256x128xf32, #tpu.memory_space<any>> -> memref<1x128xf32, #tpu.memory_space<any>>
    %c13_i32_118 = arith.constant 13 : i32
    %c0_i32_119 = arith.constant 0 : i32
    %166 = tpu.memref_slice %arg5[%c13_i32_118, %c0_i32_119] : memref<16x128xf32, #tpu.memory_space<vmem>> -> memref<1x128xf32, #tpu.memory_space<vmem>>
    %167 = tpu.memref_slice %arg6[%c13_i32_116] : memref<16x!tpu.dma_semaphore, #tpu.memory_space<semaphore_mem>> -> memref<1x!tpu.dma_semaphore, #tpu.memory_space<semaphore_mem>>
    %168 = tpu.memref_squeeze %167 : memref<1x!tpu.dma_semaphore, #tpu.memory_space<semaphore_mem>> -> memref<!tpu.dma_semaphore, #tpu.memory_space<semaphore_mem>>
    tpu.wait_dma2 semaphore(%168 : memref<!tpu.dma_semaphore, #tpu.memory_space<semaphore_mem>>) src(%165 : memref<1x128xf32, #tpu.memory_space<any>>) dst(%166 : memref<1x128xf32, #tpu.memory_space<vmem>>)
    %c14_i32_120 = arith.constant 14 : i32
    %c0_i32_121 = arith.constant 0 : i32
    %169 = tpu.memref_slice %arg3[%101, %c0_i32_121] : memref<256x128xf32, #tpu.memory_space<any>> -> memref<1x128xf32, #tpu.memory_space<any>>
    %c14_i32_122 = arith.constant 14 : i32
    %c0_i32_123 = arith.constant 0 : i32
    %170 = tpu.memref_slice %arg5[%c14_i32_122, %c0_i32_123] : memref<16x128xf32, #tpu.memory_space<vmem>> -> memref<1x128xf32, #tpu.memory_space<vmem>>
    %171 = tpu.memref_slice %arg6[%c14_i32_120] : memref<16x!tpu.dma_semaphore, #tpu.memory_space<semaphore_mem>> -> memref<1x!tpu.dma_semaphore, #tpu.memory_space<semaphore_mem>>
    %172 = tpu.memref_squeeze %171 : memref<1x!tpu.dma_semaphore, #tpu.memory_space<semaphore_mem>> -> memref<!tpu.dma_semaphore, #tpu.memory_space<semaphore_mem>>
    tpu.wait_dma2 semaphore(%172 : memref<!tpu.dma_semaphore, #tpu.memory_space<semaphore_mem>>) src(%169 : memref<1x128xf32, #tpu.memory_space<any>>) dst(%170 : memref<1x128xf32, #tpu.memory_space<vmem>>)
    %c15_i32_124 = arith.constant 15 : i32
    %c0_i32_125 = arith.constant 0 : i32
    %173 = tpu.memref_slice %arg3[%108, %c0_i32_125] : memref<256x128xf32, #tpu.memory_space<any>> -> memref<1x128xf32, #tpu.memory_space<any>>
    %c15_i32_126 = arith.constant 15 : i32
    %c0_i32_127 = arith.constant 0 : i32
    %174 = tpu.memref_slice %arg5[%c15_i32_126, %c0_i32_127] : memref<16x128xf32, #tpu.memory_space<vmem>> -> memref<1x128xf32, #tpu.memory_space<vmem>>
    %175 = tpu.memref_slice %arg6[%c15_i32_124] : memref<16x!tpu.dma_semaphore, #tpu.memory_space<semaphore_mem>> -> memref<1x!tpu.dma_semaphore, #tpu.memory_space<semaphore_mem>>
    %176 = tpu.memref_squeeze %175 : memref<1x!tpu.dma_semaphore, #tpu.memory_space<semaphore_mem>> -> memref<!tpu.dma_semaphore, #tpu.memory_space<semaphore_mem>>
    tpu.wait_dma2 semaphore(%176 : memref<!tpu.dma_semaphore, #tpu.memory_space<semaphore_mem>>) src(%173 : memref<1x128xf32, #tpu.memory_space<any>>) dst(%174 : memref<1x128xf32, #tpu.memory_space<vmem>>)
    %c0 = arith.constant 0 : index
    %c0_128 = arith.constant 0 : index
    %177 = vector.load %arg5[%c0, %c0_128] : memref<16x128xf32, #tpu.memory_space<vmem>>, vector<16x128xf32>
    %c0_129 = arith.constant 0 : index
    %c0_130 = arith.constant 0 : index
    %178 = vector.load %arg2[%c0_129, %c0_130] : memref<16x128xf32, #tpu.memory_space<vmem>>, vector<16x128xf32>
    %179 = arith.addf %177, %178 : vector<16x128xf32>
    %180 = arith.truncf %179 : vector<16x128xf32> to vector<16x128xbf16>
    %c0_131 = arith.constant 0 : index
    %c0_132 = arith.constant 0 : index
    %181 = vector.load %arg4[%c0_131, %c0_132] : memref<16x128xbf16, #tpu.memory_space<vmem>>, vector<16x128xbf16>
    tpu.vector_store %arg4[%c0_131, %c0_132], %180 {strides = array<i32>} : memref<16x128xbf16, #tpu.memory_space<vmem>>, vector<16x128xbf16>,
    return
  }
  func.func @transform_0(%arg0: i32, %arg1: memref<128xi32, #tpu.memory_space<smem>>) -> (i32, i32) {
    %c1_i32 = arith.constant 1 : i32
    %c0_i32 = arith.constant 0 : i32
    %0 = arith.cmpi eq, %c1_i32, %c0_i32 : i32
    %c1_i32_0 = arith.constant 1 : i32
    %1 = arith.select %0, %c1_i32_0, %c1_i32 : i32
    %2 = arith.remsi %arg0, %1 : i32
    %c0_i32_1 = arith.constant 0 : i32
    %3 = arith.cmpi ne, %2, %c0_i32_1 : i32
    %c0_i32_2 = arith.constant 0 : i32
    %4 = arith.cmpi slt, %2, %c0_i32_2 : i32
    %c0_i32_3 = arith.constant 0 : i32
    %5 = arith.cmpi slt, %1, %c0_i32_3 : i32
    %6 = arith.xori %4, %5 : i1
    %7 = arith.andi %6, %3 : i1
    %8 = arith.addi %2, %1 : i32
    %9 = arith.select %7, %8, %2 : i32
    %c0_i32_4 = arith.constant 0 : i32
    %c0_i32_5 = arith.constant 0 : i32
    return %9, %c0_i32_4 : i32, i32
  }
  func.func @transform_2(%arg0: i32, %arg1: memref<128xi32, #tpu.memory_space<smem>>) -> (i32, i32) {
    %c0_i32 = arith.constant 0 : i32
    %c0_i32_0 = arith.constant 0 : i32
    return %arg0, %c0_i32 : i32, i32
  }
}

</mosaic_0001>

<bundles_post_ra>
// kernel: tpu_custom_call.1
= control target key start
LH: loop header
LB: loop body
LE: loop exit
PB: predicated region body
PF: predicated region fallthrough
CT: control target
= control target key end

     0   :  { %s1290_s15 = smov [#allocation5]   ;;  %s1623_s0 = inlined_call_operand.hbm [shape: s32[128], index: 0, kind: input, shape index: {}]   ;;  %s1624_s1 = inlined_call_operand.hbm [shape: f32[16,128], index: 1, kind: input, shape index: {}]   ;;  %s1625_s2 = inlined_call_operand.hbm [shape: f32[256,128], index: 2, kind: input, shape index: {}]   ;;  %s1626_s3 = inlined_call_operand.hbm [shape: bf16[128,128], index: 3, kind: output, shape index: {}]  }
   0x1   :  { %1632 = sst [smem:[#allocation64_spill]] %s1624_s1  ;;  %s9_s14 = sshll.u32 %s1623_s0, 4  ;;  %s10_s14 = int_to_ptr.hbm [resolvable:$true] %s9_s14 }
   0x2   :  { %12 = dma.hbm_to_smem %s10_s14, 16, %s1290_s15, [#allocation4] }
   0x3   :  { %1232 = dma.done.wait [#allocation4], 16 }
   0x4   :  { %1233 = vsyncadd [#allocation4], 4294967280 }
   0x5   :  { %15 = sfence }
   0x6   :  { %16 = vsyncpa [#allocation7], 0 }
   0x7   :  { %17 = vsyncpa [#allocation8], 0 }
   0x8   :  { %19 = vsyncpa [#allocation8 + $0x1], 0  ;;  %s1335_s16 = smov 0   ;;  %s1337_s17 = smov 0  }
   0x9   :  { %s1339_s18 = smov 0   ;;  %s1341_s19 = smov 0  }
   0xa LB: > { %s1356_s0 = sadd.s32 4294967295, %s1288_s19   ;;  %s657_s20 = sadd.s32 4294967294, %s1288_s19   ;;  %s1288_s19 = sphi %s1341_s19, %s1652_s19   ;;  %s1284_s18 = sphi %s1339_s18, %s1651_s18   ;;  %s1280_s17 = sphi %s1337_s17, %s1650_s17   ;;  %s1276_s16 = sphi %s1335_s16, %s1649_s16  }
   0xb   : > { %s1360_s21 = sadd.s32 1, %s1288_s19   ;;  %s53_s22 = sadd.s32 1, %s1284_s18 }
   0xc   : > { %s50_s23 = ssub.s32 %s1288_s19, %s1360_s21  ;;  %p63_p0 = scmp.ne.s32.totalorder %s1284_s18, %s1280_s17 }
   0xd   : > { %p51_p1 = scmp.eq.s32.totalorder %s50_s23, 0  ;;  %p64_p2 = scmp.eq.s32.totalorder %s1356_s0, 7 }
   0xe   : > { %p69_p3 = scmp.ne.s32.totalorder %s1280_s17, %s1276_s16  ;;  %p70_p4 = scmp.eq.s32.totalorder %s657_s20, 7 }
   0xf   : > { %s1371_s24 = scalar_select %p51_p1, %s1284_s18, %s53_s22  }
  0x10   : > { %p1373_p5 = por %p64_p2, %p63_p0  ;;  %p1377_p6 = por %p70_p4, %p69_p3 }
  0x11   : > { %p658_p7 = scmp.ge.s32.totalorder %s1288_s19, 1  ;;  %p77_p8 = scmp.lt.s32.totalorder %s1288_s19, 9 }
  0x12   : > { %p705_p9 = scmp.eq.s32.totalorder %s1356_s0, 0  ;;  %s1635_s1 = sld [smem:[#allocation64_spill]] }
  0x13   : > { %p78_p10 = pnand %p658_p7, %p77_p8  ;;  %s1291_s30 = smov [#allocation6]  }
  0x14   : > { %s90_s4 = sshll.u32 %s1291_s30, 4  ;;  %s1292_s5 = smov 128   ;;  %s91_s4 = int_to_ptr.vmem [resolvable:$true] %s90_s4 }
  0x15   : > { %p697_p11 = pneg %p78_p10  ;;  %s1293_s6 = smov 8  }
  0x16   : > { %106 = sbr.rel (%p78_p10) target bundleno = 295 (0x127), region = 24 }
  0x17   : > { %p698_p12 = pnand %p705_p9, %p697_p11 }
  0x18   : > { %s88_s29 = sshll.u32 %s1635_s1, 4  ;;  %s89_s29 = int_to_ptr.hbm [resolvable:$true] %s88_s29 }
  0x19   : > { %700 = dma.hbm_to_vmem [thread:$0]  (!%p698_p12), %s89_s29, 256, %s91_s4, [#allocation7], %s1292_s5, %s1292_s5, %s1293_s6  }
  0x1b   : > { %1235 = dma.done.wait (%p705_p9), [#allocation7], 256  }
  0x1c   : > { %1237 = vsyncadd (%p705_p9), [#allocation7], 4294967040  ;;  %s1627_s7 = sand.u32 1, %s1280_s17   ;;  %s1395_s8 = sshll.u32 %s1356_s0, 4 }
  0x1d   : > { %s1399_s9 = sshll.u32 %s1627_s7, 3  ;;  %s124_s10 = sld [smem:[#allocation5 + %s1395_s8]] }
  0x1e   : > { %s1294_s11 = smov [#allocation2]   ;;  %s139_s13 = sadd.s32 1, %s1395_s8 }
  0x1f   : > { %s135_s12 = sshll.u32 %s1294_s11, 4  ;;  %s140_s14 = sld [smem:[#allocation5 + %s139_s13]]  ;;  %s136_s12 = int_to_ptr.vmem [resolvable:$true] %s135_s12 }
  0x20   : > { %s157_s15 = sadd.s32 2, %s1395_s8  ;;  %s1295_s20 = smov [#allocation2 + $0x1]  }
  0x21   : > { %s1404_s22 = sshll.u32 %s1295_s20, 4  ;;  %s158_s23 = sld [smem:[#allocation5 + %s157_s15]]  ;;  %s154_s22 = int_to_ptr.vmem [resolvable:$true] %s1404_s22 }
  0x22   : > { %s1296_s4 = smov [#allocation2 + $0x2]   ;;  %s1415_s20 = scalar_lea.hbm %s1625_s2, 256 }
  0x23   : > { %s125_s29 = scalar_lea.hbm %s1625_s2, %s124_s10  ;;  %s1410_s5 = sshll.u32 %s1296_s4, 4  ;;  %s172_s5 = int_to_ptr.vmem [resolvable:$true] %s1410_s5 }
  0x24   : > { %s133_s30 = sshll.u32 %s125_s29, 4  ;;  %s134_s30 = int_to_ptr.hbm [resolvable:$true] %s133_s30 }
  0x25   : > { %s804_s6 = sshra.s32 %s134_s30, 4  ;;  %s805_s6 = int_to_ptr.hbm [resolvable:$true] %s804_s6 }
  0x26   : > { %s806_s11 = scalar_lea.hbm %s805_s6, 1  ;;  %p809_p0 = scmp.lt.s32.totalorder %s805_s6, %s1625_s2 }
  0x27   : > { %p807_p13 = scmp.ne.s32.totalorder %s805_s6, %s806_s11  ;;  %p810_p1 = scmp.lt.s32.totalorder %s1415_s20, %s806_s11 }
  0x29   : > { %p811_p2 = por %p810_p1, %p809_p0 }
  0x2b   : > { %p812_p3 = pnand %p811_p2, %p807_p13 }
  0x2d   : > { %815 = shalt.err (!%p812_p3)  }
  0x2e   : > { %138 = dma.hbm_to_vmem [thread:$0]  %s134_s30, 16, %s136_s12, [#allocation3] }
  0x2f   : > { %s141_s28 = scalar_lea.hbm %s1625_s2, %s140_s14  ;;  %s159_s13 = scalar_lea.hbm %s1625_s2, %s158_s23 }
  0x30   : > { %s151_s7 = sshll.u32 %s141_s28, 4  ;;  %s169_s1 = sshll.u32 %s159_s13, 4  ;;  %s152_s7 = int_to_ptr.hbm [resolvable:$true] %s151_s7  ;;  %s170_s1 = int_to_ptr.hbm [resolvable:$true] %s169_s1 }
  0x31   : > { %s828_s6 = sshra.s32 %s152_s7, 4  ;;  %s829_s6 = int_to_ptr.hbm [resolvable:$true] %s828_s6 }
  0x32   : > { %s830_s11 = scalar_lea.hbm %s829_s6, 1  ;;  %p833_p7 = scmp.lt.s32.totalorder %s829_s6, %s1625_s2 }
  0x33   : > { %p831_p4 = scmp.ne.s32.totalorder %s829_s6, %s830_s11  ;;  %p834_p8 = scmp.lt.s32.totalorder %s1415_s20, %s830_s11 }
  0x35   : > { %p835_p9 = por %p834_p8, %p833_p7 }
  0x37   : > { %p836_p10 = pnand %p835_p9, %p831_p4 }
  0x39   : > { %839 = shalt.err (!%p836_p10)  }
  0x3a   : > { %156 = dma.hbm_to_vmem [thread:$0]  %s152_s7, 16, %s154_s22, [#allocation3 + $0x1] }
  0x3b   : > { %s175_s14 = sadd.s32 3, %s1395_s8  ;;  %s852_s23 = sshra.s32 %s170_s1, 4  ;;  %s853_s23 = int_to_ptr.hbm [resolvable:$true] %s852_s23 }
  0x3c   : > { %s854_s30 = scalar_lea.hbm %s853_s23, 1  ;;  %p857_p12 = scmp.lt.s32.totalorder %s853_s23, %s1625_s2 }
  0x3d   : > { %p855_p11 = scmp.ne.s32.totalorder %s853_s23, %s854_s30  ;;  %p858_p13 = scmp.lt.s32.totalorder %s1415_s20, %s854_s30 }
  0x3f   : > { %p859_p0 = por %p858_p13, %p857_p12 }
  0x41   : > { %p860_p1 = pnand %p859_p0, %p855_p11 }
  0x43   : > { %863 = shalt.err (!%p860_p1)  }
  0x44   : > { %174 = dma.hbm_to_vmem [thread:$0]  %s170_s1, 16, %s172_s5, [#allocation3 + $0x2] }
  0x45   : > { %s176_s28 = sld [smem:[#allocation5 + %s175_s14]]  ;;  %s1297_s29 = smov [#allocation2 + $0x3]  }
  0x46   : > { %s189_s22 = sshll.u32 %s1297_s29, 4  ;;  %s193_s7 = sadd.s32 4, %s1395_s8  ;;  %s190_s22 = int_to_ptr.vmem [resolvable:$true] %s189_s22 }
  0x47   : > { %s194_s4 = sld [smem:[#allocation5 + %s193_s7]]  ;;  %s211_s13 = sadd.s32 5, %s1395_s8 }
  0x48   : > { %s1298_s6 = smov [#allocation2 + $0x4]   ;;  %s212_s15 = sld [smem:[#allocation5 + %s211_s13]] }
  0x49   : > { %s1441_s11 = sshll.u32 %s1298_s6, 4  ;;  %s1299_s1 = smov [#allocation2 + $0x5]  }
  0x4a   : > { %1636 = sst [smem:[#allocation63_spill]] %s1441_s11  ;;  %s1447_s30 = sshll.u32 %s1299_s1, 4  ;;  %s226_s30 = int_to_ptr.vmem [resolvable:$true] %s1447_s30 }
  0x4b   : > { %s177_s5 = scalar_lea.hbm %s1625_s2, %s176_s28 }
  0x4c   : > { %s187_s14 = sshll.u32 %s177_s5, 4  ;;  %s188_s14 = int_to_ptr.hbm [resolvable:$true] %s187_s14 }
  0x4d   : > { %s195_s29 = scalar_lea.hbm %s1625_s2, %s194_s4  ;;  %s876_s7 = sshra.s32 %s188_s14, 4  ;;  %s877_s7 = int_to_ptr.hbm [resolvable:$true] %s876_s7 }
  0x4e   : > { %s878_s6 = scalar_lea.hbm %s877_s7, 1  ;;  %p881_p3 = scmp.lt.s32.totalorder %s877_s7, %s1625_s2 }
  0x4f   : > { %p879_p2 = scmp.ne.s32.totalorder %s877_s7, %s878_s6  ;;  %p882_p4 = scmp.lt.s32.totalorder %s1415_s20, %s878_s6 }
  0x51   : > { %p883_p7 = por %p882_p4, %p881_p3 }
  0x53   : > { %p884_p8 = pnand %p883_p7, %p879_p2 }
  0x55   : > { %887 = shalt.err (!%p884_p8)  }
  0x56   : > { %192 = dma.hbm_to_vmem [thread:$0]  %s188_s14, 16, %s190_s22, [#allocation3 + $0x3] }
  0x57   : > { %s205_s28 = sshll.u32 %s195_s29, 4  ;;  %s213_s5 = scalar_lea.hbm %s1625_s2, %s212_s15  ;;  %s206_s28 = int_to_ptr.hbm [resolvable:$true] %s205_s28 }
  0x58   : > { %s223_s4 = sshll.u32 %s213_s5, 4  ;;  %s900_s1 = sshra.s32 %s206_s28, 4  ;;  %s901_s1 = int_to_ptr.hbm [resolvable:$true] %s900_s1  ;;  %s224_s4 = int_to_ptr.hbm [resolvable:$true] %s223_s4 }
  0x59   : > { %s902_s10 = scalar_lea.hbm %s901_s1, 1  ;;  %p905_p10 = scmp.lt.s32.totalorder %s901_s1, %s1625_s2 }
  0x5a   : > { %p903_p9 = scmp.ne.s32.totalorder %s901_s1, %s902_s10  ;;  %p906_p11 = scmp.lt.s32.totalorder %s1415_s20, %s902_s10 }
  0x5c   : > { %p907_p12 = por %p906_p11, %p905_p10 }
  0x5e   : > { %p908_p13 = pnand %p907_p12, %p903_p9 }
  0x60   : > { %911 = shalt.err (!%p908_p13)  }
  0x61   : > { %s1637_s22 = sld [smem:[#allocation63_spill]]  ;;  %s229_s15 = sadd.s32 6, %s1395_s8 }
  0x62   : > { %s924_s29 = sshra.s32 %s224_s4, 4  ;;  %s925_s29 = int_to_ptr.hbm [resolvable:$true] %s924_s29 }
  0x63   : > { %s926_s7 = scalar_lea.hbm %s925_s29, 1  ;;  %p929_p1 = scmp.lt.s32.totalorder %s925_s29, %s1625_s2 }
  0x64   : > { %p927_p0 = scmp.ne.s32.totalorder %s925_s29, %s926_s7  ;;  %p930_p2 = scmp.lt.s32.totalorder %s1415_s20, %s926_s7 }
  0x66   : > { %p931_p3 = por %p930_p2, %p929_p1 }
  0x67   : > { %s1638_s14 = int_to_ptr.vmem [resolvable:$true] %s1637_s22 }
  0x68   : > { %210 = dma.hbm_to_vmem [thread:$0]  %s206_s28, 16, %s1638_s14, [#allocation3 + $0x4] }
  0x69   : > { %p932_p4 = pnand %p931_p3, %p927_p0 }
  0x6b   : > { %935 = shalt.err (!%p932_p4)  }
  0x6c   : > { %228 = dma.hbm_to_vmem [thread:$0]  %s224_s4, 16, %s226_s30, [#allocation3 + $0x5] }
  0x6d   : > { %s230_s28 = sld [smem:[#allocation5 + %s229_s15]]  ;;  %s1300_s12 = smov [#allocation2 + $0x6]  }
  0x6e   : > { %s243_s23 = sshll.u32 %s1300_s12, 4  ;;  %s247_s5 = sadd.s32 7, %s1395_s8  ;;  %s244_s23 = int_to_ptr.vmem [resolvable:$true] %s243_s23 }
  0x6f   : > { %s248_s1 = sld [smem:[#allocation5 + %s247_s5]]  ;;  %s265_s10 = sadd.s32 8, %s1395_s8 }
  0x70   : > { %s1301_s27 = smov [#allocation2 + $0x7]   ;;  %s266_s22 = sld [smem:[#allocation5 + %s265_s10]] }
  0x71   : > { %s1475_s11 = sshll.u32 %s1301_s27, 4  ;;  %s1302_s6 = smov [#allocation2 + $0x8]  }
  0x72   : > { %1639 = sst [smem:[#allocation63_spill]] %s1475_s11  ;;  %s1481_s30 = sshll.u32 %s1302_s6, 4  ;;  %s280_s30 = int_to_ptr.vmem [resolvable:$true] %s1481_s30 }
  0x73   : > { %s231_s7 = scalar_lea.hbm %s1625_s2, %s230_s28 }
  0x74   : > { %s241_s4 = sshll.u32 %s231_s7, 4  ;;  %s242_s4 = int_to_ptr.hbm [resolvable:$true] %s241_s4 }
  0x75   : > { %s249_s12 = scalar_lea.hbm %s1625_s2, %s248_s1  ;;  %s948_s5 = sshra.s32 %s242_s4, 4  ;;  %s949_s5 = int_to_ptr.hbm [resolvable:$true] %s948_s5 }
  0x76   : > { %s950_s27 = scalar_lea.hbm %s949_s5, 1  ;;  %p953_p8 = scmp.lt.s32.totalorder %s949_s5, %s1625_s2 }
  0x77   : > { %p951_p7 = scmp.ne.s32.totalorder %s949_s5, %s950_s27  ;;  %p954_p9 = scmp.lt.s32.totalorder %s1415_s20, %s950_s27 }
  0x79   : > { %p955_p10 = por %p954_p9, %p953_p8 }
  0x7b   : > { %p956_p11 = pnand %p955_p10, %p951_p7 }
  0x7d   : > { %959 = shalt.err (!%p956_p11)  }
  0x7e   : > { %246 = dma.hbm_to_vmem [thread:$0]  %s242_s4, 16, %s244_s23, [#allocation3 + $0x6] }
  0x7f   : > { %s259_s28 = sshll.u32 %s249_s12, 4  ;;  %s267_s7 = scalar_lea.hbm %s1625_s2, %s266_s22  ;;  %s260_s28 = int_to_ptr.hbm [resolvable:$true] %s259_s28 }
  0x80   : > { %s277_s1 = sshll.u32 %s267_s7, 4  ;;  %s972_s6 = sshra.s32 %s260_s28, 4  ;;  %s973_s6 = int_to_ptr.hbm [resolvable:$true] %s972_s6  ;;  %s278_s1 = int_to_ptr.hbm [resolvable:$true] %s277_s1 }
  0x81   : > { %s974_s15 = scalar_lea.hbm %s973_s6, 1  ;;  %p977_p13 = scmp.lt.s32.totalorder %s973_s6, %s1625_s2 }
  0x82   : > { %p975_p12 = scmp.ne.s32.totalorder %s973_s6, %s974_s15  ;;  %p978_p0 = scmp.lt.s32.totalorder %s1415_s20, %s974_s15 }
  0x84   : > { %p979_p1 = por %p978_p0, %p977_p13 }
  0x86   : > { %p980_p2 = pnand %p979_p1, %p975_p12 }
  0x88   : > { %983 = shalt.err (!%p980_p2)  }
  0x89   : > { %s1640_s23 = sld [smem:[#allocation63_spill]]  ;;  %s283_s22 = sadd.s32 9, %s1395_s8 }
  0x8a   : > { %s996_s12 = sshra.s32 %s278_s1, 4  ;;  %s997_s12 = int_to_ptr.hbm [resolvable:$true] %s996_s12 }
  0x8b   : > { %s998_s5 = scalar_lea.hbm %s997_s12, 1  ;;  %p1001_p4 = scmp.lt.s32.totalorder %s997_s12, %s1625_s2 }
  0x8c   : > { %p999_p3 = scmp.ne.s32.totalorder %s997_s12, %s998_s5  ;;  %p1002_p7 = scmp.lt.s32.totalorder %s1415_s20, %s998_s5 }
  0x8e   : > { %p1003_p8 = por %p1002_p7, %p1001_p4 }
  0x8f   : > { %s1641_s4 = int_to_ptr.vmem [resolvable:$true] %s1640_s23 }
  0x90   : > { %264 = dma.hbm_to_vmem [thread:$0]  %s260_s28, 16, %s1641_s4, [#allocation3 + $0x7] }
  0x91   : > { %p1004_p9 = pnand %p1003_p8, %p999_p3 }
  0x93   : > { %1007 = shalt.err (!%p1004_p9)  }
  0x94   : > { %282 = dma.hbm_to_vmem [thread:$0]  %s278_s1, 16, %s280_s30, [#allocation3 + $0x8] }
  0x95   : > { %s284_s28 = sld [smem:[#allocation5 + %s283_s22]]  ;;  %s1303_s14 = smov [#allocation2 + $0x9]  }
  0x96   : > { %s297_s29 = sshll.u32 %s1303_s14, 4  ;;  %s301_s7 = sadd.s32 10, %s1395_s8  ;;  %s298_s29 = int_to_ptr.vmem [resolvable:$true] %s297_s29 }
  0x97   : > { %s302_s6 = sld [smem:[#allocation5 + %s301_s7]]  ;;  %s319_s15 = sadd.s32 11, %s1395_s8 }
  0x98   : > { %s1304_s13 = smov [#allocation2 + $0xa]   ;;  %s320_s23 = sld [smem:[#allocation5 + %s319_s15]] }
  0x99   : > { %s1509_s11 = sshll.u32 %s1304_s13, 4  ;;  %s1305_s27 = smov [#allocation2 + $0xb]  }
  0x9a   : > { %1642 = sst [smem:[#allocation63_spill]] %s1509_s11  ;;  %s1515_s30 = sshll.u32 %s1305_s27, 4  ;;  %s334_s30 = int_to_ptr.vmem [resolvable:$true] %s1515_s30 }
  0x9b   : > { %s285_s5 = scalar_lea.hbm %s1625_s2, %s284_s28 }
  0x9c   : > { %s295_s1 = sshll.u32 %s285_s5, 4  ;;  %s296_s1 = int_to_ptr.hbm [resolvable:$true] %s295_s1 }
  0x9d   : > { %s303_s14 = scalar_lea.hbm %s1625_s2, %s302_s6  ;;  %s1020_s7 = sshra.s32 %s296_s1, 4  ;;  %s1021_s7 = int_to_ptr.hbm [resolvable:$true] %s1020_s7 }
  0x9e   : > { %s1022_s13 = scalar_lea.hbm %s1021_s7, 1  ;;  %p1025_p11 = scmp.lt.s32.totalorder %s1021_s7, %s1625_s2 }
  0x9f   : > { %p1023_p10 = scmp.ne.s32.totalorder %s1021_s7, %s1022_s13  ;;  %p1026_p12 = scmp.lt.s32.totalorder %s1415_s20, %s1022_s13 }
  0xa1   : > { %p1027_p13 = por %p1026_p12, %p1025_p11 }
  0xa3   : > { %p1028_p0 = pnand %p1027_p13, %p1023_p10 }
  0xa5   : > { %1031 = shalt.err (!%p1028_p0)  }
  0xa6   : > { %300 = dma.hbm_to_vmem [thread:$0]  %s296_s1, 16, %s298_s29, [#allocation3 + $0x9] }
  0xa7   : > { %s313_s28 = sshll.u32 %s303_s14, 4  ;;  %s321_s5 = scalar_lea.hbm %s1625_s2, %s320_s23  ;;  %s314_s28 = int_to_ptr.hbm [resolvable:$true] %s313_s28 }
  0xa8   : > { %s331_s6 = sshll.u32 %s321_s5, 4  ;;  %s1044_s27 = sshra.s32 %s314_s28, 4  ;;  %s1045_s27 = int_to_ptr.hbm [resolvable:$true] %s1044_s27  ;;  %s332_s6 = int_to_ptr.hbm [resolvable:$true] %s331_s6 }
  0xa9   : > { %s1046_s22 = scalar_lea.hbm %s1045_s27, 1  ;;  %p1049_p2 = scmp.lt.s32.totalorder %s1045_s27, %s1625_s2 }
  0xaa   : > { %p1047_p1 = scmp.ne.s32.totalorder %s1045_s27, %s1046_s22  ;;  %p1050_p3 = scmp.lt.s32.totalorder %s1415_s20, %s1046_s22 }
  0xac   : > { %p1051_p4 = por %p1050_p3, %p1049_p2 }
  0xae   : > { %p1052_p7 = pnand %p1051_p4, %p1047_p1 }
  0xb0   : > { %1055 = shalt.err (!%p1052_p7)  }
  0xb1   : > { %s1643_s29 = sld [smem:[#allocation63_spill]]  ;;  %s337_s23 = sadd.s32 12, %s1395_s8 }
  0xb2   : > { %s1068_s14 = sshra.s32 %s332_s6, 4  ;;  %s1069_s14 = int_to_ptr.hbm [resolvable:$true] %s1068_s14 }
  0xb3   : > { %s1070_s7 = scalar_lea.hbm %s1069_s14, 1  ;;  %p1073_p9 = scmp.lt.s32.totalorder %s1069_s14, %s1625_s2 }
  0xb4   : > { %p1071_p8 = scmp.ne.s32.totalorder %s1069_s14, %s1070_s7  ;;  %p1074_p10 = scmp.lt.s32.totalorder %s1415_s20, %s1070_s7 }
  0xb6   : > { %p1075_p11 = por %p1074_p10, %p1073_p9 }
  0xb7   : > { %s1644_s1 = int_to_ptr.vmem [resolvable:$true] %s1643_s29 }
  0xb8   : > { %318 = dma.hbm_to_vmem [thread:$0]  %s314_s28, 16, %s1644_s1, [#allocation3 + $0xa] }
  0xb9   : > { %p1076_p12 = pnand %p1075_p11, %p1071_p8 }
  0xbb   : > { %1079 = shalt.err (!%p1076_p12)  }
  0xbc   : > { %336 = dma.hbm_to_vmem [thread:$0]  %s332_s6, 16, %s334_s30, [#allocation3 + $0xb] }
  0xbd   : > { %s338_s28 = sld [smem:[#allocation5 + %s337_s23]]  ;;  %s1306_s4 = smov [#allocation2 + $0xc]  }
  0xbe   : > { %s351_s12 = sshll.u32 %s1306_s4, 4  ;;  %s355_s5 = sadd.s32 13, %s1395_s8  ;;  %s352_s12 = int_to_ptr.vmem [resolvable:$true] %s351_s12 }
  0xbf   : > { %s356_s27 = sld [smem:[#allocation5 + %s355_s5]]  ;;  %s373_s22 = sadd.s32 14, %s1395_s8 }
  0xc0   : > { %s1307_s10 = smov [#allocation2 + $0xd]   ;;  %s374_s29 = sld [smem:[#allocation5 + %s373_s22]] }
  0xc1   : > { %s1543_s11 = sshll.u32 %s1307_s10, 4  ;;  %s1308_s13 = smov [#allocation2 + $0xe]  }
  0xc2   : > { %1645 = sst [smem:[#allocation63_spill]] %s1543_s11  ;;  %s1549_s30 = sshll.u32 %s1308_s13, 4  ;;  %s388_s30 = int_to_ptr.vmem [resolvable:$true] %s1549_s30 }
  0xc3   : > { %s339_s7 = scalar_lea.hbm %s1625_s2, %s338_s28 }
  0xc4   : > { %s349_s6 = sshll.u32 %s339_s7, 4  ;;  %s350_s6 = int_to_ptr.hbm [resolvable:$true] %s349_s6 }
  0xc5   : > { %s357_s4 = scalar_lea.hbm %s1625_s2, %s356_s27  ;;  %s1092_s5 = sshra.s32 %s350_s6, 4  ;;  %s1093_s5 = int_to_ptr.hbm [resolvable:$true] %s1092_s5 }
  0xc6   : > { %s1094_s10 = scalar_lea.hbm %s1093_s5, 1  ;;  %p1097_p0 = scmp.lt.s32.totalorder %s1093_s5, %s1625_s2 }
  0xc7   : > { %p1095_p13 = scmp.ne.s32.totalorder %s1093_s5, %s1094_s10  ;;  %p1098_p1 = scmp.lt.s32.totalorder %s1415_s20, %s1094_s10 }
  0xc9   : > { %p1099_p2 = por %p1098_p1, %p1097_p0 }
  0xcb   : > { %p1100_p3 = pnand %p1099_p2, %p1095_p13 }
  0xcd   : > { %1103 = shalt.err (!%p1100_p3)  }
  0xce   : > { %354 = dma.hbm_to_vmem [thread:$0]  %s350_s6, 16, %s352_s12, [#allocation3 + $0xc] }
  0xcf   : > { %s367_s28 = sshll.u32 %s357_s4, 4  ;;  %s375_s7 = scalar_lea.hbm %s1625_s2, %s374_s29  ;;  %s368_s28 = int_to_ptr.hbm [resolvable:$true] %s367_s28 }
  0xd0   : > { %s385_s27 = sshll.u32 %s375_s7, 4  ;;  %s1116_s13 = sshra.s32 %s368_s28, 4  ;;  %s1117_s13 = int_to_ptr.hbm [resolvable:$true] %s1116_s13  ;;  %s386_s27 = int_to_ptr.hbm [resolvable:$true] %s385_s27 }
  0xd1   : > { %s1118_s23 = scalar_lea.hbm %s1117_s13, 1  ;;  %p1121_p7 = scmp.lt.s32.totalorder %s1117_s13, %s1625_s2 }
  0xd2   : > { %p1119_p4 = scmp.ne.s32.totalorder %s1117_s13, %s1118_s23  ;;  %p1122_p8 = scmp.lt.s32.totalorder %s1415_s20, %s1118_s23 }
  0xd4   : > { %p1123_p9 = por %p1122_p8, %p1121_p7 }
  0xd6   : > { %p1124_p10 = pnand %p1123_p9, %p1119_p4 }
  0xd8   : > { %1127 = shalt.err (!%p1124_p10)  }
  0xd9   : > { %s1646_s12 = sld [smem:[#allocation63_spill]]  ;;  %s391_s29 = sadd.s32 15, %s1395_s8 }
  0xda   : > { %s1140_s4 = sshra.s32 %s386_s27, 4  ;;  %s1141_s4 = int_to_ptr.hbm [resolvable:$true] %s1140_s4 }
  0xdb   : > { %s1142_s5 = scalar_lea.hbm %s1141_s4, 1  ;;  %p1145_p12 = scmp.lt.s32.totalorder %s1141_s4, %s1625_s2 }
  0xdc   : > { %p1143_p11 = scmp.ne.s32.totalorder %s1141_s4, %s1142_s5  ;;  %p1146_p13 = scmp.lt.s32.totalorder %s1415_s20, %s1142_s5 }
  0xde   : > { %p1147_p0 = por %p1146_p13, %p1145_p12 }
  0xdf   : > { %s1647_s6 = int_to_ptr.vmem [resolvable:$true] %s1646_s12 }
  0xe0   : > { %372 = dma.hbm_to_vmem [thread:$0]  %s368_s28, 16, %s1647_s6, [#allocation3 + $0xd] }
  0xe1   : > { %p1148_p1 = pnand %p1147_p0, %p1143_p11 }
  0xe3   : > { %1151 = shalt.err (!%p1148_p1)  }
  0xe4   : > { %390 = dma.hbm_to_vmem [thread:$0]  %s386_s27, 16, %s388_s30, [#allocation3 + $0xe] }
  0xe5   : > { %s392_s1 = sld [smem:[#allocation5 + %s391_s29]]  ;;  %s1309_s28 = smov [#allocation2 + $0xf]  }
  0xe6   : > { %s405_s14 = sshll.u32 %s1309_s28, 4  ;;  %s406_s14 = int_to_ptr.vmem [resolvable:$true] %s405_s14 }
  0xeb   : > { %s393_s13 = scalar_lea.hbm %s1625_s2, %s392_s1 }
  0xec   : > { %s403_s23 = sshll.u32 %s393_s13, 4  ;;  %s404_s23 = int_to_ptr.hbm [resolvable:$true] %s403_s23 }
  0xed   : > { %s1164_s15 = sshra.s32 %s404_s23, 4  ;;  %s1165_s15 = int_to_ptr.hbm [resolvable:$true] %s1164_s15 }
  0xee   : > { %s1166_s11 = scalar_lea.hbm %s1165_s15, 1  ;;  %p1169_p3 = scmp.lt.s32.totalorder %s1165_s15, %s1625_s2 }
  0xef   : > { %p1167_p2 = scmp.ne.s32.totalorder %s1165_s15, %s1166_s11  ;;  %p1170_p4 = scmp.lt.s32.totalorder %s1415_s20, %s1166_s11 }
  0xf1   : > { %p1171_p7 = por %p1170_p4, %p1169_p3 }
  0xf3   : > { %p1172_p8 = pnand %p1171_p7, %p1167_p2 }
  0xf5   : > { %1175 = shalt.err (!%p1172_p8)  }
  0xf6   : > { %408 = dma.hbm_to_vmem [thread:$0]  %s404_s23, 16, %s406_s14, [#allocation3 + $0xf] }
  0xf7   : > { %s121_s30 = scalar_lea.vmem [#allocation9], %s1399_s9 }
  0xf8   : > { %1238 = dma.done.wait [#allocation3], 16 }
  0xf9   : > { %1239 = vsyncadd [#allocation3], 4294967280 }
  0xfa   : > { %1240 = dma.done.wait [#allocation3 + $0x1], 16 }
  0xfb   : > { %1241 = vsyncadd [#allocation3 + $0x1], 4294967280 }
  0xfc   : > { %1242 = dma.done.wait [#allocation3 + $0x2], 16 }
  0xfd   : > { %1243 = vsyncadd [#allocation3 + $0x2], 4294967280 }
  0xfe   : > { %1244 = dma.done.wait [#allocation3 + $0x3], 16 }
  0xff   : > { %1245 = vsyncadd [#allocation3 + $0x3], 4294967280 }
 0x100   : > { %1246 = dma.done.wait [#allocation3 + $0x4], 16 }
 0x101   : > { %1247 = vsyncadd [#allocation3 + $0x4], 4294967280 }
 0x102   : > { %1248 = dma.done.wait [#allocation3 + $0x5], 16 }
 0x103   : > { %1249 = vsyncadd [#allocation3 + $0x5], 4294967280 }
 0x104   : > { %1250 = dma.done.wait [#allocation3 + $0x6], 16 }
 0x105   : > { %1251 = vsyncadd [#allocation3 + $0x6], 4294967280 }
 0x106   : > { %1252 = dma.done.wait [#allocation3 + $0x7], 16 }
 0x107   : > { %1253 = vsyncadd [#allocation3 + $0x7], 4294967280 }
 0x108   : > { %1254 = dma.done.wait [#allocation3 + $0x8], 16 }
 0x109   : > { %1255 = vsyncadd [#allocation3 + $0x8], 4294967280 }
 0x10a   : > { %1256 = dma.done.wait [#allocation3 + $0x9], 16 }
 0x10b   : > { %1257 = vsyncadd [#allocation3 + $0x9], 4294967280 }
 0x10c   : > { %1258 = dma.done.wait [#allocation3 + $0xa], 16 }
 0x10d   : > { %1259 = vsyncadd [#allocation3 + $0xa], 4294967280 }
 0x10e   : > { %1260 = dma.done.wait [#allocation3 + $0xb], 16 }
 0x10f   : > { %1261 = vsyncadd [#allocation3 + $0xb], 4294967280 }
 0x110   : > { %1262 = dma.done.wait [#allocation3 + $0xc], 16 }
 0x111   : > { %1263 = vsyncadd [#allocation3 + $0xc], 4294967280 }
 0x112   : > { %1264 = dma.done.wait [#allocation3 + $0xd], 16 }
 0x113   : > { %1265 = vsyncadd [#allocation3 + $0xd], 4294967280 }
 0x114   : > { %1266 = dma.done.wait [#allocation3 + $0xe], 16 }
 0x115   : > { %1267 = vsyncadd [#allocation3 + $0xe], 4294967280 }
 0x116   : > { %1268 = dma.done.wait [#allocation3 + $0xf], 16 }
 0x117   : > { %1269 = vsyncadd [#allocation3 + $0xf], 4294967280  ;;  %s685_s20 = sshll.u32 %s1356_s0, 3  ;;  %v442_v0 = vld [vmem:[#allocation2] sm:$0xff]  ;;  %v443_v1 = vld [vmem:[#allocation2 + $0x8] sm:$0xff]  ;;  %s1589_s5 = sshll.u32 %s121_s30, 4  ;;  %s466_s5 = int_to_ptr.vmem [resolvable:$true] %s1589_s5 }
 0x118   : > { %s464_s4 = scalar_lea.hbm %s1626_s3, %s685_s20  ;;  %v444_v2 = vld [vmem:[#allocation6] sm:$0xff]  ;;  %v445_v3 = vld [vmem:[#allocation6 + $0x8] sm:$0xff]  ;;  %s1648_s0 = sand.u32 1, %s1280_s17  }
 0x119   : > { %s467_s10 = sshll.u32 %s464_s4, 4  ;;  %v446_v4 = vadd.f32 %v444_v2, %v442_v0  ;;  %v447_v5 = vadd.f32 %v445_v3, %v443_v1  ;;  %s453_s22 = scalar_lea.sflag [#allocation8], %s1648_s0  ;;  %s468_s10 = int_to_ptr.hbm [resolvable:$true] %s467_s10 }
 0x11a   : > { %s1202_s1 = sshra.s32 %s468_s10, 4  ;;  %s1208_s7 = scalar_lea.hbm %s1626_s3, 64  ;;  %s1203_s1 = int_to_ptr.hbm [resolvable:$true] %s1202_s1 }
 0x11b   : > { %v689_v6 = vpack.c.bf16 %v447_v5, %v446_v4  ;;  %s1204_s28 = scalar_lea.hbm %s1203_s1, 8  ;;  %p1209_p12 = scmp.lt.s32.totalorder %s1203_s1, %s1626_s3 }
 0x11c   : > { %p1205_p9 = scmp.ne.s32.totalorder %s1203_s1, %s1204_s28  ;;  %p1210_p13 = scmp.lt.s32.totalorder %s1208_s7, %s1204_s28 }
 0x11d   : > { %690 = vst [vmem:[%s121_s30] sm:$0xff] %v689_v6  }
 0x11e   : > { %p1206_p10 = pnand %p1205_p9, %p1373_p5  ;;  %p1211_p0 = por %p1210_p13, %p1209_p12 }
 0x120   : > { %p1207_p11 = pneg %p1206_p10 }
 0x122   : > { %p1212_p1 = pnand %p1211_p0, %p1207_p11 }
 0x124   : > { %1215 = shalt.err (!%p1212_p1)
}
 0x125   : > { %s1310_s9 = smov 64   ;;  %s1311_s15 = smov 4  }
 0x126   : > { %695 = dma.vmem_to_hbm [thread:$0]  (%p1373_p5), %s466_s5, 128, %s468_s10, %s453_s22, %s1310_s9, %s1310_s9, %s1311_s15  }
 0x127 PF: > { %p707_p2 = scmp.ge.s32.totalorder %s1288_s19, 2  ;;  %s482_s11 = sand.u32 1, %s1276_s16  }
 0x128   : > { %s483_s12 = scalar_lea.sflag [#allocation8], %s482_s11 }
 0x129   : > { %p702_p3 = pnand %p707_p2, %p1377_p6 }
 0x12b   : > { %p703_p4 = pneg %p702_p3 }
 0x12d   : > { %1271 = dma.done.wait (%p703_p4), %s483_s12, 128  }
 0x12e   : > { %1273 = vsyncadd (%p703_p4), %s483_s12, 4294967168  ;;  %p22_p7 = scmp.ge.s32.totalorder %s1360_s21, 10   ;;  %s1649_s16 = smov %s1280_s17 }
 0x12f   : > { %s1650_s17 = smov %s1284_s18  ;;  %s1651_s18 = smov %s1371_s24 }
 0x130   : > { %s1652_s19 = smov %s1360_s21  ;;  %24 = sbr.rel (!%p22_p7) target bundleno = 10 (0xa), region = 186 }
 0x135   :  { %489 = vsyncpa [#allocation7], 1 }
 0x136   :  { %491 = vsyncpa [#allocation7 + $0x1], 1 }
 0x137   :  { %492 = vsyncpa [#allocation8], 1 }
 0x138   :  { %494 = vsyncpa [#allocation8 + $0x1], 1 }
 0x139   :  { %495 = vsyncmov [#allocation3] }
 0x13c   :  { %s496_s19 = vpop.sfrf %495 }
 0x13d   :  { %p669_p5 = scmp.ne.s32.totalorder %s496_s19, 0 }
 0x13f   :  { %500 = shalt.err (%p669_p5)  }
 0x140   :  { %502 = vsyncmov [#allocation3 + $0x1] }
 0x143   :  { %s503_s25 = vpop.sfrf %502 }
 0x144   :  { %p670_p6 = scmp.ne.s32.totalorder %s503_s25, 0 }
 0x146   :  { %507 = shalt.err (%p670_p6)  }
 0x147   :  { %509 = vsyncmov [#allocation3 + $0x2] }
 0x14a   :  { %s510_s26 = vpop.sfrf %509 }
 0x14b   :  { %p671_p8 = scmp.ne.s32.totalorder %s510_s26, 0 }
 0x14d   :  { %514 = shalt.err (%p671_p8)  }
 0x14e   :  { %516 = vsyncmov [#allocation3 + $0x3] }
 0x151   :  { %s517_s24 = vpop.sfrf %516 }
 0x152   :  { %p672_p9 = scmp.ne.s32.totalorder %s517_s24, 0 }
 0x154   :  { %521 = shalt.err (%p672_p9)  }
 0x155   :  { %523 = vsyncmov [#allocation3 + $0x4] }
 0x158   :  { %s524_s2 = vpop.sfrf %523 }
 0x159   :  { %p673_p10 = scmp.ne.s32.totalorder %s524_s2, 0 }
 0x15b   :  { %528 = shalt.err (%p673_p10)  }
 0x15c   :  { %530 = vsyncmov [#allocation3 + $0x5] }
 0x15f   :  { %s531_s3 = vpop.sfrf %530 }
 0x160   :  { %p674_p11 = scmp.ne.s32.totalorder %s531_s3, 0 }
 0x162   :  { %535 = shalt.err (%p674_p11)  }
 0x163   :  { %537 = vsyncmov [#allocation3 + $0x6] }
 0x166   :  { %s538_s16 = vpop.sfrf %537 }
 0x167   :  { %p675_p12 = scmp.ne.s32.totalorder %s538_s16, 0 }
 0x169   :  { %542 = shalt.err (%p675_p12)  }
 0x16a   :  { %544 = vsyncmov [#allocation3 + $0x7] }
 0x16d   :  { %s545_s17 = vpop.sfrf %544 }
 0x16e   :  { %p676_p13 = scmp.ne.s32.totalorder %s545_s17, 0 }
 0x170   :  { %549 = shalt.err (%p676_p13)  }
 0x171   :  { %551 = vsyncmov [#allocation3 + $0x8] }
 0x174   :  { %s552_s18 = vpop.sfrf %551 }
 0x175   :  { %p677_p0 = scmp.ne.s32.totalorder %s552_s18, 0 }
 0x177   :  { %556 = shalt.err (%p677_p0)  }
 0x178   :  { %558 = vsyncmov [#allocation3 + $0x9] }
 0x17b   :  { %s559_s21 = vpop.sfrf %558 }
 0x17c   :  { %p678_p1 = scmp.ne.s32.totalorder %s559_s21, 0 }
 0x17e   :  { %563 = shalt.err (%p678_p1)  }
 0x17f   :  { %565 = vsyncmov [#allocation3 + $0xa] }
 0x182   :  { %s566_s6 = vpop.sfrf %565 }
 0x183   :  { %p679_p2 = scmp.ne.s32.totalorder %s566_s6, 0 }
 0x185   :  { %570 = shalt.err (%p679_p2)  }
 0x186   :  { %572 = vsyncmov [#allocation3 + $0xb] }
 0x189   :  { %s573_s30 = vpop.sfrf %572 }
 0x18a   :  { %p680_p3 = scmp.ne.s32.totalorder %s573_s30, 0 }
 0x18c   :  { %577 = shalt.err (%p680_p3)  }
 0x18d   :  { %579 = vsyncmov [#allocation3 + $0xc] }
 0x190   :  { %s580_s20 = vpop.sfrf %579 }
 0x191   :  { %p681_p4 = scmp.ne.s32.totalorder %s580_s20, 0 }
 0x193   :  { %584 = shalt.err (%p681_p4)  }
 0x194   :  { %586 = vsyncmov [#allocation3 + $0xd] }
 0x197   :  { %s587_s27 = vpop.sfrf %586 }
 0x198   :  { %p682_p7 = scmp.ne.s32.totalorder %s587_s27, 0 }
 0x19a   :  { %591 = shalt.err (%p682_p7)  }
 0x19b   :  { %593 = vsyncmov [#allocation3 + $0xe] }
 0x19e   :  { %s594_s29 = vpop.sfrf %593 }
 0x19f   :  { %p683_p5 = scmp.ne.s32.totalorder %s594_s29, 0 }
 0x1a1   :  { %598 = shalt.err (%p683_p5)  }
 0x1a2   :  { %600 = vsyncmov [#allocation3 + $0xf] }
 0x1a5   :  { %s601_s4 = vpop.sfrf %600 }
 0x1a6   :  { %p684_p6 = scmp.ne.s32.totalorder %s601_s4, 0 }
 0x1a8   :  { %605 = shalt.err (%p684_p6)  }

</bundles_post_ra>
